<compile_context>
chip_gen: v7x
topology: tpu7x:2x2x1
jax: 0.10.0
libtpu: 0.0.40
codegen_flags: <defaults>
</compile_context>

<pallas_src>
import jax
import jax.numpy as jnp
from jax import lax
from jax.experimental import pallas as pl
from jax.experimental.pallas import tpu as pltpu


# ----------------------------- Fused CBAM kernel -----------------------------

def _make_cbam_kernel(C, H, W, hid, padl, padt):
    HW = H * W
    inv_hw = 1.0 / float(HW)
    inv_c = 1.0 / float(C)
    KS, KR = 7, 3                       # conv kernel size / radius

    def kernel(x_ref,
               w1m_ref, b1m_ref, w2m_ref, b2m_ref,
               w1a_ref, b1a_ref, w2a_ref, b2a_ref,
               wcol_ref, bconv_ref,
               o_ref, pad_ref):
        x = x_ref[...]                                          # (C, HW) f32

        # ---------------- channel attention (VPU only, no 1-column MXU dots) ----
        mx = jnp.max(x, axis=1, keepdims=True)                  # (C, 1) lane reduce
        av = jnp.sum(x, axis=1, keepdims=True) * inv_hw         # (C, 1)

        def branch(v, w1t_ref, b1_ref, w2_ref, b2_ref):
            # layer 1: (C,hid)*(C,1) -> sublane reduce -> (1,hid)
            h = jnp.sum(w1t_ref[...] * v, axis=0, keepdims=True) + b1_ref[...]
            h = jnp.maximum(h, 0.0)
            # layer 2: (C,hid)*(1,hid) -> lane reduce -> (C,1)
            z = jnp.sum(w2_ref[...] * h, axis=1, keepdims=True) + b2_ref[...]
            return jax.nn.sigmoid(z)                            # (C, 1)

        cw = jax.nn.sigmoid(branch(mx, w1m_ref, b1m_ref, w2m_ref, b2m_ref)
                            + branch(av, w1a_ref, b1a_ref, w2a_ref, b2a_ref))
        x_ca = x * cw                                           # (C, HW) channel scale

        # ---------------- spatial attention ------------------------------------
        chmax = jnp.max(x_ca, axis=0, keepdims=True)            # (1, HW) sublane reduce
        chavg = jnp.sum(x_ca, axis=0, keepdims=True) * inv_c    # (1, HW)

        # per-pixel column index within its image row (flat layout)
        col = lax.broadcasted_iota(jnp.int32, (1, HW), 1)
        if W & (W - 1) == 0:
            colmod = jnp.bitwise_and(col, W - 1)
        else:
            colmod = lax.rem(col, W)

        # Zero only the halo bands; the interior [padl-3, padl+3+HW) is fully
        # rewritten by the map stores below (stores to the same ref are ordered).
        # Deliberately NOT guarded by program_id==0: scratch is per-core under
        # megacore "parallel" partitioning.
        pad_ref[:, 0:padl + KR] = jnp.zeros((2 * KS, padl + KR), jnp.float32)
        pad_ref[:, padl + HW - KR:padt] = jnp.zeros(
            (2 * KS, padt - (padl + HW - KR)), jnp.float32)

        # Build 14 pre-masked, pre-SHIFTED rows: row r = ci*7 + kx holds its
        # channel map, horizontally masked for dx = kx-3, stored at lane offset
        # padl - dx.  With the dx shift baked into storage, every ky tap below is
        # a single (14, HW) slab load at one offset (no per-tap shifts/masks).
        for ci, mp in ((0, chmax), (1, chavg)):
            for kx in range(KS):
                dx = kx - KR
                if dx == 0:
                    masked = mp
                elif dx > 0:
                    masked = jnp.where(colmod >= dx, mp, 0.0)
                else:
                    masked = jnp.where(colmod < W + dx, mp, 0.0)
                r = ci * KS + kx
                off = padl - dx
                pad_ref[r:r + 1, off:off + HW] = masked

        # 7x7 conv (2 -> 1 channels) as 7 slab FMAs: per ky, one (14, HW) load at a
        # single static lane offset, per-sublane (14,1) weight-column multiply, and
        # a sublane (XLU) reduce; 7 independent partials are tree-summed.
        partials = []
        for ky in range(KS):
            dy = ky - KR
            start = padl + dy * W
            slab = pad_ref[:, start:start + HW]                 # (14, HW)
            wcol = wcol_ref[ky]                                 # (14, 1) VMEM
            partials.append(jnp.sum(slab * wcol, axis=0, keepdims=True))
        acc = (((partials[0] + partials[1]) + (partials[2] + partials[3]))
               + ((partials[4] + partials[5]) + partials[6])) + bconv_ref[0]
        ms = jax.nn.sigmoid(acc)                                # (1, HW)

        # lane-dense unmasked store of the full (C, HW) block
        o_ref[...] = (x_ca * ms).astype(o_ref.dtype)

    return kernel


# ----------------------------- Wrapper -----------------------------

def cbam_pallas(x, params):
    N, C, H, W = x.shape
    HW = H * W
    hid = params["w1m"].shape[0]
    KS, KR = 7, 3

    # 128-aligned halo band >= 3*W + 3 on each side (128 for W=16, 256 for W=56).
    padl = max(128, pl.cdiv(KR * W + KR, 128) * 128)
    padt = 2 * padl + HW

    x_flat = x.reshape(N, C, HW)                      # free, contiguous reinterpret

    # Per-ky weight columns for the slab conv: wcol[ky, ci*7 + kx, 0] = wconv[0, ci, ky, kx]
    wcol = jnp.transpose(params["wconv"][0], (1, 0, 2)).reshape(KS, 2 * KS, 1)

    kernel = _make_cbam_kernel(C, H, W, hid, padl, padt)

    def param_spec(shp):
        return pl.BlockSpec(shp, lambda n, _s=len(shp): (0,) * _s)

    grid_spec = pltpu.PrefetchScalarGridSpec(
        num_scalar_prefetch=0,
        grid=(N,),
        in_specs=[
            pl.BlockSpec((None, C, HW), lambda n: (n, 0, 0)),   # x (lane-dense)
            param_spec((C, hid)), param_spec((1, hid)),         # max branch: w1^T, b1
            param_spec((C, hid)), param_spec((C, 1)),           #              w2,  b2
            param_spec((C, hid)), param_spec((1, hid)),         # avg branch: w1^T, b1
            param_spec((C, hid)), param_spec((C, 1)),           #              w2,  b2
            param_spec((KS, 2 * KS, 1)),                        # conv weight columns (VMEM)
            pl.BlockSpec(memory_space=pltpu.MemorySpace.SMEM),  # conv bias (1,)
        ],
        out_specs=pl.BlockSpec((None, C, HW), lambda n: (n, 0, 0)),
        scratch_shapes=[pltpu.VMEM((2 * KS, padt), jnp.float32)],  # 14 shifted rows
    )

    # Explicit VMEM budget: double-buffered in+out blocks + scratch/param headroom,
    # clamped so production shapes keep Buffered(2) alive on v7x (64 MiB physical)
    # and v5e (16 MiB default scoped limit).
    io_block_bytes = C * HW * jnp.dtype(x_flat.dtype).itemsize
    vmem_limit = int(min(64 * 2**20, max(16 * 2**20, 4 * io_block_bytes + 4 * 2**20)))

    out = pl.pallas_call(
        kernel,
        out_shape=jax.ShapeDtypeStruct((N, C, HW), jnp.float32),
        grid_spec=grid_spec,
        compiler_params=pltpu.CompilerParams(
            dimension_semantics=("parallel",),
            vmem_limit_bytes=vmem_limit),
    )(x_flat,
      params["w1m"].T, params["b1m"].reshape(1, hid),
      params["w2m"],   params["b2m"].reshape(C, 1),
      params["w1a"].T, params["b1a"].reshape(1, hid),
      params["w2a"],   params["b2a"].reshape(C, 1),
      wcol, params["bconv"])

    return out.reshape(N, C, H, W)


# ----------------------------- Pure-JAX reference -----------------------------

def cbam_ref(x, params):
    # Matches the PyTorch module: separate MLPs per pooling branch, each ending in
    # Sigmoid, then another Sigmoid on the sum (as written in MIFNet's CBAM).
    def mlp(v, w1, b1, w2, b2):
        h = jnp.maximum(v @ w1.T + b1, 0.0)
        return jax.nn.sigmoid(h @ w2.T + b2)

    mx = jnp.max(x, axis=(2, 3))
    av = jnp.mean(x, axis=(2, 3))
    wt = jax.nn.sigmoid(
        mlp(mx, params["w1m"], params["b1m"], params["w2m"], params["b2m"]) +
        mlp(av, params["w1a"], params["b1a"], params["w2a"], params["b2a"]))
    x = x * wt[:, :, None, None]

    chmax = jnp.max(x, axis=1, keepdims=True)
    chavg = jnp.mean(x, axis=1, keepdims=True)
    cat = jnp.concatenate([chmax, chavg], axis=1)            # (N, 2, H, W)
    conv = lax.conv_general_dilated(
        cat, params["wconv"], window_strides=(1, 1),
        padding=((3, 3), (3, 3)),
        dimension_numbers=("NCHW", "OIHW", "NCHW")) + params["bconv"][None, :, None, None]
    ms = jax.nn.sigmoid(conv)
    return ms * x


# ----------------------------- Main -----------------------------

if __name__ == "__main__":
    N, C, H, W = 2, 8, 16, 16
    hid = int(C * 0.5)

    key = jax.random.PRNGKey(0)
    ks = jax.random.split(key, 12)
    f32 = jnp.float32
    x = jax.random.normal(ks[0], (N, C, H, W), f32)

    params = {
        "w1m": 0.3 * jax.random.normal(ks[1], (hid, C), f32),
        "b1m": 0.1 * jax.random.normal(ks[2], (hid,), f32),
        "w2m": 0.3 * jax.random.normal(ks[3], (C, hid), f32),
        "b2m": 0.1 * jax.random.normal(ks[4], (C,), f32),
        "w1a": 0.3 * jax.random.normal(ks[5], (hid, C), f32),
        "b1a": 0.1 * jax.random.normal(ks[6], (hid,), f32),
        "w2a": 0.3 * jax.random.normal(ks[7], (C, hid), f32),
        "b2a": 0.1 * jax.random.normal(ks[8], (C,), f32),
        "wconv": 0.2 * jax.random.normal(ks[9], (1, 2, 7, 7), f32),
        "bconv": 0.1 * jax.random.normal(ks[10], (1,), f32),
    }

    out = cbam_pallas(x, params)
    out = jax.block_until_ready(out)

    ref = cbam_ref(x, params)
    assert out.shape == (N, C, H, W)
    assert jnp.allclose(out, ref, atol=1e-3, rtol=1e-3), (
        float(jnp.max(jnp.abs(out - ref))))

    print("KERNEL_OK")
</pallas_src>

<mosaic_0001>
module attributes {stable_mosaic.version = 11 : i64} {
  func.func @kernel(%arg0: i32, %arg1: memref<1x8x256xf32, #tpu.memory_space<vmem>>, %arg2: memref<8x4xf32, #tpu.memory_space<vmem>>, %arg3: memref<1x4xf32, #tpu.memory_space<vmem>>, %arg4: memref<8x4xf32, #tpu.memory_space<vmem>>, %arg5: memref<8x1xf32, #tpu.memory_space<vmem>>, %arg6: memref<8x4xf32, #tpu.memory_space<vmem>>, %arg7: memref<1x4xf32, #tpu.memory_space<vmem>>, %arg8: memref<8x4xf32, #tpu.memory_space<vmem>>, %arg9: memref<8x1xf32, #tpu.memory_space<vmem>>, %arg10: memref<7x14x1xf32, #tpu.memory_space<vmem>>, %arg11: memref<1xf32, #tpu.memory_space<smem>>, %arg12: memref<1x8x256xf32, #tpu.memory_space<vmem>>, %arg13: memref<14x512xf32, #tpu.memory_space<vmem>>) attributes {dimension_semantics = [#tpu.dimension_semantics<parallel>], iteration_bounds = array<i64: 2>, scalar_prefetch = 0 : i64, scratch_operands = 1 : i64, tpu.core_type = #tpu.core_type<tc>, window_params = [{transform_indices = @transform_0, window_bounds = array<i64: 1, 8, 256>}, {pipeline_mode = #tpu.pipeline_mode<synchronous>, transform_indices = @transform_1, window_bounds = array<i64: 8, 4>}, {pipeline_mode = #tpu.pipeline_mode<synchronous>, transform_indices = @transform_2, window_bounds = array<i64: 1, 4>}, {pipeline_mode = #tpu.pipeline_mode<synchronous>, transform_indices = @transform_3, window_bounds = array<i64: 8, 4>}, {pipeline_mode = #tpu.pipeline_mode<synchronous>, transform_indices = @transform_4, window_bounds = array<i64: 8, 1>}, {pipeline_mode = #tpu.pipeline_mode<synchronous>, transform_indices = @transform_5, window_bounds = array<i64: 8, 4>}, {pipeline_mode = #tpu.pipeline_mode<synchronous>, transform_indices = @transform_6, window_bounds = array<i64: 1, 4>}, {pipeline_mode = #tpu.pipeline_mode<synchronous>, transform_indices = @transform_7, window_bounds = array<i64: 8, 4>}, {pipeline_mode = #tpu.pipeline_mode<synchronous>, transform_indices = @transform_8, window_bounds = array<i64: 8, 1>}, {pipeline_mode = #tpu.pipeline_mode<synchronous>, transform_indices = @transform_9, window_bounds = array<i64: 7, 14, 1>}, {transform_indices = @transform_10, window_bounds = array<i64: 1>}, {transform_indices = @transform_11, window_bounds = array<i64: 1, 8, 256>}]} {
    %c0 = arith.constant 0 : index
    %c0_0 = arith.constant 0 : index
    %c0_1 = arith.constant 0 : index
    %0 = vector.load %arg1[%c0, %c0_0, %c0_1] : memref<1x8x256xf32, #tpu.memory_space<vmem>>, vector<1x8x256xf32>
    %1 = vector.shape_cast %0 : vector<1x8x256xf32> to vector<8x256xf32>
    %cst = arith.constant dense<0xFF800000> : vector<8xf32>
    %2 = vector.multi_reduction <maximumf>, %1, %cst [1] : vector<8x256xf32> to vector<8xf32>
    %3 = vector.shape_cast %2 : vector<8xf32> to vector<8x1xf32>
    %cst_2 = arith.constant dense<0.000000e+00> : vector<8xf32>
    %4 = vector.multi_reduction <add>, %1, %cst_2 [1] : vector<8x256xf32> to vector<8xf32>
    %5 = vector.shape_cast %4 : vector<8xf32> to vector<8x1xf32>
    %cst_3 = arith.constant 3.906250e-03 : f32
    %6 = vector.broadcast %cst_3 : f32 to vector<8x1xf32>
    %7 = arith.mulf %5, %6 : vector<8x1xf32>
    %c0_4 = arith.constant 0 : index
    %c0_5 = arith.constant 0 : index
    %8 = vector.load %arg2[%c0_4, %c0_5] : memref<8x4xf32, #tpu.memory_space<vmem>>, vector<8x4xf32>
    %9 = vector.broadcast %3 : vector<8x1xf32> to vector<8x4xf32>
    %10 = arith.mulf %8, %9 : vector<8x4xf32>
    %cst_6 = arith.constant dense<0.000000e+00> : vector<4xf32>
    %11 = vector.multi_reduction <add>, %10, %cst_6 [0] : vector<8x4xf32> to vector<4xf32>
    %12 = vector.shape_cast %11 : vector<4xf32> to vector<1x4xf32>
    %c0_7 = arith.constant 0 : index
    %c0_8 = arith.constant 0 : index
    %13 = vector.load %arg3[%c0_7, %c0_8] : memref<1x4xf32, #tpu.memory_space<vmem>>, vector<1x4xf32>
    %14 = arith.addf %12, %13 : vector<1x4xf32>
    %cst_9 = arith.constant 0.000000e+00 : f32
    %15 = vector.broadcast %cst_9 : f32 to vector<1x4xf32>
    %16 = arith.maximumf %14, %15 : vector<1x4xf32>
    %c0_10 = arith.constant 0 : index
    %c0_11 = arith.constant 0 : index
    %17 = vector.load %arg4[%c0_10, %c0_11] : memref<8x4xf32, #tpu.memory_space<vmem>>, vector<8x4xf32>
    %18 = vector.broadcast %16 : vector<1x4xf32> to vector<8x4xf32>
    %19 = arith.mulf %17, %18 : vector<8x4xf32>
    %cst_12 = arith.constant dense<0.000000e+00> : vector<8xf32>
    %20 = vector.multi_reduction <add>, %19, %cst_12 [1] : vector<8x4xf32> to vector<8xf32>
    %21 = vector.shape_cast %20 : vector<8xf32> to vector<8x1xf32>
    %c0_13 = arith.constant 0 : index
    %c0_14 = arith.constant 0 : index
    %22 = vector.load %arg5[%c0_13, %c0_14] : memref<8x1xf32, #tpu.memory_space<vmem>>, vector<8x1xf32>
    %23 = arith.addf %21, %22 : vector<8x1xf32>
    %24 = arith.negf %23 : vector<8x1xf32>
    %25 = math.exp %24 : vector<8x1xf32>
    %cst_15 = arith.constant 1.000000e+00 : f32
    %26 = vector.broadcast %cst_15 : f32 to vector<8x1xf32>
    %27 = arith.addf %26, %25 : vector<8x1xf32>
    %28 = arith.divf %26, %27 : vector<8x1xf32>
    %c0_16 = arith.constant 0 : index
    %c0_17 = arith.constant 0 : index
    %29 = vector.load %arg6[%c0_16, %c0_17] : memref<8x4xf32, #tpu.memory_space<vmem>>, vector<8x4xf32>
    %30 = vector.broadcast %7 : vector<8x1xf32> to vector<8x4xf32>
    %31 = arith.mulf %29, %30 : vector<8x4xf32>
    %cst_18 = arith.constant dense<0.000000e+00> : vector<4xf32>
    %32 = vector.multi_reduction <add>, %31, %cst_18 [0] : vector<8x4xf32> to vector<4xf32>
    %33 = vector.shape_cast %32 : vector<4xf32> to vector<1x4xf32>
    %c0_19 = arith.constant 0 : index
    %c0_20 = arith.constant 0 : index
    %34 = vector.load %arg7[%c0_19, %c0_20] : memref<1x4xf32, #tpu.memory_space<vmem>>, vector<1x4xf32>
    %35 = arith.addf %33, %34 : vector<1x4xf32>
    %cst_21 = arith.constant 0.000000e+00 : f32
    %36 = vector.broadcast %cst_21 : f32 to vector<1x4xf32>
    %37 = arith.maximumf %35, %36 : vector<1x4xf32>
    %c0_22 = arith.constant 0 : index
    %c0_23 = arith.constant 0 : index
    %38 = vector.load %arg8[%c0_22, %c0_23] : memref<8x4xf32, #tpu.memory_space<vmem>>, vector<8x4xf32>
    %39 = vector.broadcast %37 : vector<1x4xf32> to vector<8x4xf32>
    %40 = arith.mulf %38, %39 : vector<8x4xf32>
    %cst_24 = arith.constant dense<0.000000e+00> : vector<8xf32>
    %41 = vector.multi_reduction <add>, %40, %cst_24 [1] : vector<8x4xf32> to vector<8xf32>
    %42 = vector.shape_cast %41 : vector<8xf32> to vector<8x1xf32>
    %c0_25 = arith.constant 0 : index
    %c0_26 = arith.constant 0 : index
    %43 = vector.load %arg9[%c0_25, %c0_26] : memref<8x1xf32, #tpu.memory_space<vmem>>, vector<8x1xf32>
    %44 = arith.addf %42, %43 : vector<8x1xf32>
    %45 = arith.negf %44 : vector<8x1xf32>
    %46 = math.exp %45 : vector<8x1xf32>
    %cst_27 = arith.constant 1.000000e+00 : f32
    %47 = vector.broadcast %cst_27 : f32 to vector<8x1xf32>
    %48 = arith.addf %47, %46 : vector<8x1xf32>
    %49 = arith.divf %47, %48 : vector<8x1xf32>
    %50 = arith.addf %28, %49 : vector<8x1xf32>
    %51 = arith.negf %50 : vector<8x1xf32>
    %52 = math.exp %51 : vector<8x1xf32>
    %cst_28 = arith.constant 1.000000e+00 : f32
    %53 = vector.broadcast %cst_28 : f32 to vector<8x1xf32>
    %54 = arith.addf %53, %52 : vector<8x1xf32>
    %55 = arith.divf %53, %54 : vector<8x1xf32>
    %56 = vector.broadcast %55 : vector<8x1xf32> to vector<8x256xf32>
    %57 = arith.mulf %1, %56 : vector<8x256xf32>
    %cst_29 = arith.constant dense<0xFF800000> : vector<256xf32>
    %58 = vector.multi_reduction <maximumf>, %57, %cst_29 [0] : vector<8x256xf32> to vector<256xf32>
    %59 = vector.shape_cast %58 : vector<256xf32> to vector<1x256xf32>
    %cst_30 = arith.constant dense<0.000000e+00> : vector<256xf32>
    %60 = vector.multi_reduction <add>, %57, %cst_30 [0] : vector<8x256xf32> to vector<256xf32>
    %61 = vector.shape_cast %60 : vector<256xf32> to vector<1x256xf32>
    %cst_31 = arith.constant 1.250000e-01 : f32
    %62 = vector.broadcast %cst_31 : f32 to vector<1x256xf32>
    %63 = arith.mulf %61, %62 : vector<1x256xf32>
    %64 = tpu.iota {dimensions = array<i32: 1>} : vector<1x256xi32>
    %c15_i32 = arith.constant 15 : i32
    %65 = vector.broadcast %c15_i32 : i32 to vector<1x256xi32>
    %66 = arith.andi %64, %65 : vector<1x256xi32>
    %cst_32 = arith.constant 0.000000e+00 : f32
    %67 = vector.broadcast %cst_32 : f32 to vector<14x131xf32>
    %c0_33 = arith.constant 0 : index
    %c0_34 = arith.constant 0 : index
    %68 = vector.load %arg13[%c0_33, %c0_34] : memref<14x512xf32, #tpu.memory_space<vmem>>, vector<14x131xf32>
    tpu.vector_store %arg13[%c0_33, %c0_34], %67 {strides = array<i32>} : memref<14x512xf32, #tpu.memory_space<vmem>>, vector<14x131xf32>,
    %cst_35 = arith.constant 0.000000e+00 : f32
    %69 = vector.broadcast %cst_35 : f32 to vector<14x131xf32>
    %c0_36 = arith.constant 0 : index
    %c381 = arith.constant 381 : index
    %70 = vector.load %arg13[%c0_36, %c381] : memref<14x512xf32, #tpu.memory_space<vmem>>, vector<14x131xf32>
    tpu.vector_store %arg13[%c0_36, %c381], %69 {strides = array<i32>} : memref<14x512xf32, #tpu.memory_space<vmem>>, vector<14x131xf32>,
    %c13_i32 = arith.constant 13 : i32
    %71 = vector.broadcast %c13_i32 : i32 to vector<1x256xi32>
    %72 = arith.cmpi slt, %66, %71 : vector<1x256xi32>
    %cst_37 = arith.constant 0.000000e+00 : f32
    %73 = vector.broadcast %cst_37 : f32 to vector<1x256xf32>
    %74 = arith.select %72, %59, %73 : vector<1x256xi1>, vector<1x256xf32>
    %c0_38 = arith.constant 0 : index
    %c131 = arith.constant 131 : index
    %75 = vector.load %arg13[%c0_38, %c131] : memref<14x512xf32, #tpu.memory_space<vmem>>, vector<1x256xf32>
    tpu.vector_store %arg13[%c0_38, %c131], %74 {strides = array<i32>} : memref<14x512xf32, #tpu.memory_space<vmem>>, vector<1x256xf32>,
    %c14_i32 = arith.constant 14 : i32
    %76 = vector.broadcast %c14_i32 : i32 to vector<1x256xi32>
    %77 = arith.cmpi slt, %66, %76 : vector<1x256xi32>
    %cst_39 = arith.constant 0.000000e+00 : f32
    %78 = vector.broadcast %cst_39 : f32 to vector<1x256xf32>
    %79 = arith.select %77, %59, %78 : vector<1x256xi1>, vector<1x256xf32>
    %c1 = arith.constant 1 : index
    %c130 = arith.constant 130 : index
    %80 = vector.load %arg13[%c1, %c130] : memref<14x512xf32, #tpu.memory_space<vmem>>, vector<1x256xf32>
    tpu.vector_store %arg13[%c1, %c130], %79 {strides = array<i32>} : memref<14x512xf32, #tpu.memory_space<vmem>>, vector<1x256xf32>,
    %c15_i32_40 = arith.constant 15 : i32
    %81 = vector.broadcast %c15_i32_40 : i32 to vector<1x256xi32>
    %82 = arith.cmpi slt, %66, %81 : vector<1x256xi32>
    %cst_41 = arith.constant 0.000000e+00 : f32
    %83 = vector.broadcast %cst_41 : f32 to vector<1x256xf32>
    %84 = arith.select %82, %59, %83 : vector<1x256xi1>, vector<1x256xf32>
    %c2 = arith.constant 2 : index
    %c129 = arith.constant 129 : index
    %85 = vector.load %arg13[%c2, %c129] : memref<14x512xf32, #tpu.memory_space<vmem>>, vector<1x256xf32>
    tpu.vector_store %arg13[%c2, %c129], %84 {strides = array<i32>} : memref<14x512xf32, #tpu.memory_space<vmem>>, vector<1x256xf32>,
    %c3 = arith.constant 3 : index
    %c128 = arith.constant 128 : index
    %86 = vector.load %arg13[%c3, %c128] : memref<14x512xf32, #tpu.memory_space<vmem>>, vector<1x256xf32>
    tpu.vector_store %arg13[%c3, %c128], %59 {strides = array<i32>} : memref<14x512xf32, #tpu.memory_space<vmem>>, vector<1x256xf32>,
    %c1_i32 = arith.constant 1 : i32
    %87 = vector.broadcast %c1_i32 : i32 to vector<1x256xi32>
    %88 = arith.cmpi sge, %66, %87 : vector<1x256xi32>
    %cst_42 = arith.constant 0.000000e+00 : f32
    %89 = vector.broadcast %cst_42 : f32 to vector<1x256xf32>
    %90 = arith.select %88, %59, %89 : vector<1x256xi1>, vector<1x256xf32>
    %c4 = arith.constant 4 : index
    %c127 = arith.constant 127 : index
    %91 = vector.load %arg13[%c4, %c127] : memref<14x512xf32, #tpu.memory_space<vmem>>, vector<1x256xf32>
    tpu.vector_store %arg13[%c4, %c127], %90 {strides = array<i32>} : memref<14x512xf32, #tpu.memory_space<vmem>>, vector<1x256xf32>,
    %c2_i32 = arith.constant 2 : i32
    %92 = vector.broadcast %c2_i32 : i32 to vector<1x256xi32>
    %93 = arith.cmpi sge, %66, %92 : vector<1x256xi32>
    %cst_43 = arith.constant 0.000000e+00 : f32
    %94 = vector.broadcast %cst_43 : f32 to vector<1x256xf32>
    %95 = arith.select %93, %59, %94 : vector<1x256xi1>, vector<1x256xf32>
    %c5 = arith.constant 5 : index
    %c126 = arith.constant 126 : index
    %96 = vector.load %arg13[%c5, %c126] : memref<14x512xf32, #tpu.memory_space<vmem>>, vector<1x256xf32>
    tpu.vector_store %arg13[%c5, %c126], %95 {strides = array<i32>} : memref<14x512xf32, #tpu.memory_space<vmem>>, vector<1x256xf32>,
    %c3_i32 = arith.constant 3 : i32
    %97 = vector.broadcast %c3_i32 : i32 to vector<1x256xi32>
    %98 = arith.cmpi sge, %66, %97 : vector<1x256xi32>
    %cst_44 = arith.constant 0.000000e+00 : f32
    %99 = vector.broadcast %cst_44 : f32 to vector<1x256xf32>
    %100 = arith.select %98, %59, %99 : vector<1x256xi1>, vector<1x256xf32>
    %c6 = arith.constant 6 : index
    %c125 = arith.constant 125 : index
    %101 = vector.load %arg13[%c6, %c125] : memref<14x512xf32, #tpu.memory_space<vmem>>, vector<1x256xf32>
    tpu.vector_store %arg13[%c6, %c125], %100 {strides = array<i32>} : memref<14x512xf32, #tpu.memory_space<vmem>>, vector<1x256xf32>,
    %c13_i32_45 = arith.constant 13 : i32
    %102 = vector.broadcast %c13_i32_45 : i32 to vector<1x256xi32>
    %103 = arith.cmpi slt, %66, %102 : vector<1x256xi32>
    %cst_46 = arith.constant 0.000000e+00 : f32
    %104 = vector.broadcast %cst_46 : f32 to vector<1x256xf32>
    %105 = arith.select %103, %63, %104 : vector<1x256xi1>, vector<1x256xf32>
    %c7 = arith.constant 7 : index
    %c131_47 = arith.constant 131 : index
    %106 = vector.load %arg13[%c7, %c131_47] : memref<14x512xf32, #tpu.memory_space<vmem>>, vector<1x256xf32>
    tpu.vector_store %arg13[%c7, %c131_47], %105 {strides = array<i32>} : memref<14x512xf32, #tpu.memory_space<vmem>>, vector<1x256xf32>,
    %c14_i32_48 = arith.constant 14 : i32
    %107 = vector.broadcast %c14_i32_48 : i32 to vector<1x256xi32>
    %108 = arith.cmpi slt, %66, %107 : vector<1x256xi32>
    %cst_49 = arith.constant 0.000000e+00 : f32
    %109 = vector.broadcast %cst_49 : f32 to vector<1x256xf32>
    %110 = arith.select %108, %63, %109 : vector<1x256xi1>, vector<1x256xf32>
    %c8 = arith.constant 8 : index
    %c130_50 = arith.constant 130 : index
    %111 = vector.load %arg13[%c8, %c130_50] : memref<14x512xf32, #tpu.memory_space<vmem>>, vector<1x256xf32>
    tpu.vector_store %arg13[%c8, %c130_50], %110 {strides = array<i32>} : memref<14x512xf32, #tpu.memory_space<vmem>>, vector<1x256xf32>,
    %c15_i32_51 = arith.constant 15 : i32
    %112 = vector.broadcast %c15_i32_51 : i32 to vector<1x256xi32>
    %113 = arith.cmpi slt, %66, %112 : vector<1x256xi32>
    %cst_52 = arith.constant 0.000000e+00 : f32
    %114 = vector.broadcast %cst_52 : f32 to vector<1x256xf32>
    %115 = arith.select %113, %63, %114 : vector<1x256xi1>, vector<1x256xf32>
    %c9 = arith.constant 9 : index
    %c129_53 = arith.constant 129 : index
    %116 = vector.load %arg13[%c9, %c129_53] : memref<14x512xf32, #tpu.memory_space<vmem>>, vector<1x256xf32>
    tpu.vector_store %arg13[%c9, %c129_53], %115 {strides = array<i32>} : memref<14x512xf32, #tpu.memory_space<vmem>>, vector<1x256xf32>,
    %c10 = arith.constant 10 : index
    %c128_54 = arith.constant 128 : index
    %117 = vector.load %arg13[%c10, %c128_54] : memref<14x512xf32, #tpu.memory_space<vmem>>, vector<1x256xf32>
    tpu.vector_store %arg13[%c10, %c128_54], %63 {strides = array<i32>} : memref<14x512xf32, #tpu.memory_space<vmem>>, vector<1x256xf32>,
    %c1_i32_55 = arith.constant 1 : i32
    %118 = vector.broadcast %c1_i32_55 : i32 to vector<1x256xi32>
    %119 = arith.cmpi sge, %66, %118 : vector<1x256xi32>
    %cst_56 = arith.constant 0.000000e+00 : f32
    %120 = vector.broadcast %cst_56 : f32 to vector<1x256xf32>
    %121 = arith.select %119, %63, %120 : vector<1x256xi1>, vector<1x256xf32>
    %c11 = arith.constant 11 : index
    %c127_57 = arith.constant 127 : index
    %122 = vector.load %arg13[%c11, %c127_57] : memref<14x512xf32, #tpu.memory_space<vmem>>, vector<1x256xf32>
    tpu.vector_store %arg13[%c11, %c127_57], %121 {strides = array<i32>} : memref<14x512xf32, #tpu.memory_space<vmem>>, vector<1x256xf32>,
    %c2_i32_58 = arith.constant 2 : i32
    %123 = vector.broadcast %c2_i32_58 : i32 to vector<1x256xi32>
    %124 = arith.cmpi sge, %66, %123 : vector<1x256xi32>
    %cst_59 = arith.constant 0.000000e+00 : f32
    %125 = vector.broadcast %cst_59 : f32 to vector<1x256xf32>
    %126 = arith.select %124, %63, %125 : vector<1x256xi1>, vector<1x256xf32>
    %c12 = arith.constant 12 : index
    %c126_60 = arith.constant 126 : index
    %127 = vector.load %arg13[%c12, %c126_60] : memref<14x512xf32, #tpu.memory_space<vmem>>, vector<1x256xf32>
    tpu.vector_store %arg13[%c12, %c126_60], %126 {strides = array<i32>} : memref<14x512xf32, #tpu.memory_space<vmem>>, vector<1x256xf32>,
    %c3_i32_61 = arith.constant 3 : i32
    %128 = vector.broadcast %c3_i32_61 : i32 to vector<1x256xi32>
    %129 = arith.cmpi sge, %66, %128 : vector<1x256xi32>
    %cst_62 = arith.constant 0.000000e+00 : f32
    %130 = vector.broadcast %cst_62 : f32 to vector<1x256xf32>
    %131 = arith.select %129, %63, %130 : vector<1x256xi1>, vector<1x256xf32>
    %c13 = arith.constant 13 : index
    %c125_63 = arith.constant 125 : index
    %132 = vector.load %arg13[%c13, %c125_63] : memref<14x512xf32, #tpu.memory_space<vmem>>, vector<1x256xf32>
    tpu.vector_store %arg13[%c13, %c125_63], %131 {strides = array<i32>} : memref<14x512xf32, #tpu.memory_space<vmem>>, vector<1x256xf32>,
    %c0_64 = arith.constant 0 : index
    %c80 = arith.constant 80 : index
    %133 = vector.load %arg13[%c0_64, %c80] : memref<14x512xf32, #tpu.memory_space<vmem>>, vector<14x256xf32>
    %c0_65 = arith.constant 0 : index
    %c0_66 = arith.constant 0 : index
    %c0_67 = arith.constant 0 : index
    %134 = vector.load %arg10[%c0_65, %c0_66, %c0_67] : memref<7x14x1xf32, #tpu.memory_space<vmem>>, vector<1x14x1xf32>
    %135 = vector.shape_cast %134 : vector<1x14x1xf32> to vector<14x1xf32>
    %136 = vector.broadcast %135 : vector<14x1xf32> to vector<14x256xf32>
    %137 = arith.mulf %133, %136 : vector<14x256xf32>
    %cst_68 = arith.constant dense<0.000000e+00> : vector<256xf32>
    %138 = vector.multi_reduction <add>, %137, %cst_68 [0] : vector<14x256xf32> to vector<256xf32>
    %139 = vector.shape_cast %138 : vector<256xf32> to vector<1x256xf32>
    %c0_69 = arith.constant 0 : index
    %c96 = arith.constant 96 : index
    %140 = vector.load %arg13[%c0_69, %c96] : memref<14x512xf32, #tpu.memory_space<vmem>>, vector<14x256xf32>
    %c1_70 = arith.constant 1 : index
    %c0_71 = arith.constant 0 : index
    %c0_72 = arith.constant 0 : index
    %141 = vector.load %arg10[%c1_70, %c0_71, %c0_72] : memref<7x14x1xf32, #tpu.memory_space<vmem>>, vector<1x14x1xf32>
    %142 = vector.shape_cast %141 : vector<1x14x1xf32> to vector<14x1xf32>
    %143 = vector.broadcast %142 : vector<14x1xf32> to vector<14x256xf32>
    %144 = arith.mulf %140, %143 : vector<14x256xf32>
    %cst_73 = arith.constant dense<0.000000e+00> : vector<256xf32>
    %145 = vector.multi_reduction <add>, %144, %cst_73 [0] : vector<14x256xf32> to vector<256xf32>
    %146 = vector.shape_cast %145 : vector<256xf32> to vector<1x256xf32>
    %c0_74 = arith.constant 0 : index
    %c112 = arith.constant 112 : index
    %147 = vector.load %arg13[%c0_74, %c112] : memref<14x512xf32, #tpu.memory_space<vmem>>, vector<14x256xf32>
    %c2_75 = arith.constant 2 : index
    %c0_76 = arith.constant 0 : index
    %c0_77 = arith.constant 0 : index
    %148 = vector.load %arg10[%c2_75, %c0_76, %c0_77] : memref<7x14x1xf32, #tpu.memory_space<vmem>>, vector<1x14x1xf32>
    %149 = vector.shape_cast %148 : vector<1x14x1xf32> to vector<14x1xf32>
    %150 = vector.broadcast %149 : vector<14x1xf32> to vector<14x256xf32>
    %151 = arith.mulf %147, %150 : vector<14x256xf32>
    %cst_78 = arith.constant dense<0.000000e+00> : vector<256xf32>
    %152 = vector.multi_reduction <add>, %151, %cst_78 [0] : vector<14x256xf32> to vector<256xf32>
    %153 = vector.shape_cast %152 : vector<256xf32> to vector<1x256xf32>
    %c0_79 = arith.constant 0 : index
    %c128_80 = arith.constant 128 : index
    %154 = vector.load %arg13[%c0_79, %c128_80] : memref<14x512xf32, #tpu.memory_space<vmem>>, vector<14x256xf32>
    %c3_81 = arith.constant 3 : index
    %c0_82 = arith.constant 0 : index
    %c0_83 = arith.constant 0 : index
    %155 = vector.load %arg10[%c3_81, %c0_82, %c0_83] : memref<7x14x1xf32, #tpu.memory_space<vmem>>, vector<1x14x1xf32>
    %156 = vector.shape_cast %155 : vector<1x14x1xf32> to vector<14x1xf32>
    %157 = vector.broadcast %156 : vector<14x1xf32> to vector<14x256xf32>
    %158 = arith.mulf %154, %157 : vector<14x256xf32>
    %cst_84 = arith.constant dense<0.000000e+00> : vector<256xf32>
    %159 = vector.multi_reduction <add>, %158, %cst_84 [0] : vector<14x256xf32> to vector<256xf32>
    %160 = vector.shape_cast %159 : vector<256xf32> to vector<1x256xf32>
    %c0_85 = arith.constant 0 : index
    %c144 = arith.constant 144 : index
    %161 = vector.load %arg13[%c0_85, %c144] : memref<14x512xf32, #tpu.memory_space<vmem>>, vector<14x256xf32>
    %c4_86 = arith.constant 4 : index
    %c0_87 = arith.constant 0 : index
    %c0_88 = arith.constant 0 : index
    %162 = vector.load %arg10[%c4_86, %c0_87, %c0_88] : memref<7x14x1xf32, #tpu.memory_space<vmem>>, vector<1x14x1xf32>
    %163 = vector.shape_cast %162 : vector<1x14x1xf32> to vector<14x1xf32>
    %164 = vector.broadcast %163 : vector<14x1xf32> to vector<14x256xf32>
    %165 = arith.mulf %161, %164 : vector<14x256xf32>
    %cst_89 = arith.constant dense<0.000000e+00> : vector<256xf32>
    %166 = vector.multi_reduction <add>, %165, %cst_89 [0] : vector<14x256xf32> to vector<256xf32>
    %167 = vector.shape_cast %166 : vector<256xf32> to vector<1x256xf32>
    %c0_90 = arith.constant 0 : index
    %c160 = arith.constant 160 : index
    %168 = vector.load %arg13[%c0_90, %c160] : memref<14x512xf32, #tpu.memory_space<vmem>>, vector<14x256xf32>
    %c5_91 = arith.constant 5 : index
    %c0_92 = arith.constant 0 : index
    %c0_93 = arith.constant 0 : index
    %169 = vector.load %arg10[%c5_91, %c0_92, %c0_93] : memref<7x14x1xf32, #tpu.memory_space<vmem>>, vector<1x14x1xf32>
    %170 = vector.shape_cast %169 : vector<1x14x1xf32> to vector<14x1xf32>
    %171 = vector.broadcast %170 : vector<14x1xf32> to vector<14x256xf32>
    %172 = arith.mulf %168, %171 : vector<14x256xf32>
    %cst_94 = arith.constant dense<0.000000e+00> : vector<256xf32>
    %173 = vector.multi_reduction <add>, %172, %cst_94 [0] : vector<14x256xf32> to vector<256xf32>
    %174 = vector.shape_cast %173 : vector<256xf32> to vector<1x256xf32>
    %c0_95 = arith.constant 0 : index
    %c176 = arith.constant 176 : index
    %175 = vector.load %arg13[%c0_95, %c176] : memref<14x512xf32, #tpu.memory_space<vmem>>, vector<14x256xf32>
    %c6_96 = arith.constant 6 : index
    %c0_97 = arith.constant 0 : index
    %c0_98 = arith.constant 0 : index
    %176 = vector.load %arg10[%c6_96, %c0_97, %c0_98] : memref<7x14x1xf32, #tpu.memory_space<vmem>>, vector<1x14x1xf32>
    %177 = vector.shape_cast %176 : vector<1x14x1xf32> to vector<14x1xf32>
    %178 = vector.broadcast %177 : vector<14x1xf32> to vector<14x256xf32>
    %179 = arith.mulf %175, %178 : vector<14x256xf32>
    %cst_99 = arith.constant dense<0.000000e+00> : vector<256xf32>
    %180 = vector.multi_reduction <add>, %179, %cst_99 [0] : vector<14x256xf32> to vector<256xf32>
    %181 = vector.shape_cast %180 : vector<256xf32> to vector<1x256xf32>
    %182 = arith.addf %139, %146 : vector<1x256xf32>
    %183 = arith.addf %153, %160 : vector<1x256xf32>
    %184 = arith.addf %182, %183 : vector<1x256xf32>
    %185 = arith.addf %167, %174 : vector<1x256xf32>
    %186 = arith.addf %185, %181 : vector<1x256xf32>
    %187 = arith.addf %184, %186 : vector<1x256xf32>
    %c0_100 = arith.constant 0 : index
    %188 = memref.load %arg11[%c0_100] : memref<1xf32, #tpu.memory_space<smem>>
    %189 = vector.broadcast %188 : f32 to vector<1x256xf32>
    %190 = arith.addf %187, %189 : vector<1x256xf32>
    %191 = arith.negf %190 : vector<1x256xf32>
    %192 = math.exp %191 : vector<1x256xf32>
    %cst_101 = arith.constant 1.000000e+00 : f32
    %193 = vector.broadcast %cst_101 : f32 to vector<1x256xf32>
    %194 = arith.addf %193, %192 : vector<1x256xf32>
    %195 = arith.divf %193, %194 : vector<1x256xf32>
    %196 = vector.broadcast %195 : vector<1x256xf32> to vector<8x256xf32>
    %197 = arith.mulf %57, %196 : vector<8x256xf32>
    %c0_102 = arith.constant 0 : index
    %c0_103 = arith.constant 0 : index
    %c0_104 = arith.constant 0 : index
    %198 = vector.load %arg12[%c0_102, %c0_103, %c0_104] : memref<1x8x256xf32, #tpu.memory_space<vmem>>, vector<1x8x256xf32>
    %199 = vector.shape_cast %198 : vector<1x8x256xf32> to vector<8x256xf32>
    %200 = vector.shape_cast %197 : vector<8x256xf32> to vector<1x8x256xf32>
    tpu.vector_store %arg12[%c0_102, %c0_103, %c0_104], %200 {strides = array<i32>} : memref<1x8x256xf32, #tpu.memory_space<vmem>>, vector<1x8x256xf32>,
    return
  }
  func.func @transform_0(%arg0: i32) -> (i32, i32, i32) {
    %c0_i32 = arith.constant 0 : i32
    %c0_i32_0 = arith.constant 0 : i32
    %c0_i32_1 = arith.constant 0 : i32
    return %arg0, %c0_i32, %c0_i32_0 : i32, i32, i32
  }
  func.func @transform_1(%arg0: i32) -> (i32, i32) {
    %c0_i32 = arith.constant 0 : i32
    %c0_i32_0 = arith.constant 0 : i32
    %c0_i32_1 = arith.constant 0 : i32
    return %c0_i32, %c0_i32_0 : i32, i32
  }
  func.func @transform_2(%arg0: i32) -> (i32, i32) {
    %c0_i32 = arith.constant 0 : i32
    %c0_i32_0 = arith.constant 0 : i32
    %c0_i32_1 = arith.constant 0 : i32
    return %c0_i32, %c0_i32_0 : i32, i32
  }
  func.func @transform_3(%arg0: i32) -> (i32, i32) {
    %c0_i32 = arith.constant 0 : i32
    %c0_i32_0 = arith.constant 0 : i32
    %c0_i32_1 = arith.constant 0 : i32
    return %c0_i32, %c0_i32_0 : i32, i32
  }
  func.func @transform_4(%arg0: i32) -> (i32, i32) {
    %c0_i32 = arith.constant 0 : i32
    %c0_i32_0 = arith.constant 0 : i32
    %c0_i32_1 = arith.constant 0 : i32
    return %c0_i32, %c0_i32_0 : i32, i32
  }
  func.func @transform_5(%arg0: i32) -> (i32, i32) {
    %c0_i32 = arith.constant 0 : i32
    %c0_i32_0 = arith.constant 0 : i32
    %c0_i32_1 = arith.constant 0 : i32
    return %c0_i32, %c0_i32_0 : i32, i32
  }
  func.func @transform_6(%arg0: i32) -> (i32, i32) {
    %c0_i32 = arith.constant 0 : i32
    %c0_i32_0 = arith.constant 0 : i32
    %c0_i32_1 = arith.constant 0 : i32
    return %c0_i32, %c0_i32_0 : i32, i32
  }
  func.func @transform_7(%arg0: i32) -> (i32, i32) {
    %c0_i32 = arith.constant 0 : i32
    %c0_i32_0 = arith.constant 0 : i32
    %c0_i32_1 = arith.constant 0 : i32
    return %c0_i32, %c0_i32_0 : i32, i32
  }
  func.func @transform_8(%arg0: i32) -> (i32, i32) {
    %c0_i32 = arith.constant 0 : i32
    %c0_i32_0 = arith.constant 0 : i32
    %c0_i32_1 = arith.constant 0 : i32
    return %c0_i32, %c0_i32_0 : i32, i32
  }
  func.func @transform_9(%arg0: i32) -> (i32, i32, i32) {
    %c0_i32 = arith.constant 0 : i32
    %c0_i32_0 = arith.constant 0 : i32
    %c0_i32_1 = arith.constant 0 : i32
    %c0_i32_2 = arith.constant 0 : i32
    return %c0_i32, %c0_i32_0, %c0_i32_1 : i32, i32, i32
  }
  func.func @transform_10(%arg0: i32) -> i32 {
    %c0_i32 = arith.constant 0 : i32
    %c0_i32_0 = arith.constant 0 : i32
    return %c0_i32 : i32
  }
  func.func @transform_11(%arg0: i32) -> (i32, i32, i32) {
    %c0_i32 = arith.constant 0 : i32
    %c0_i32_0 = arith.constant 0 : i32
    %c0_i32_1 = arith.constant 0 : i32
    return %arg0, %c0_i32, %c0_i32_0 : i32, i32, i32
  }
}

</mosaic_0001>

<bundles_post_ra>
// kernel: tpu_custom_call.1
= control target key start
LH: loop header
LB: loop body
LE: loop exit
PB: predicated region body
PF: predicated region fallthrough
CT: control target
= control target key end

     0   :  { %s2357_s0 = inlined_call_operand.vmem [shape: f32[2,8,256], index: 0, kind: input, shape index: {}]   ;;  %s2358_s1 = inlined_call_operand.vmem [shape: f32[8,4], index: 1, kind: input, shape index: {}]   ;;  %s2359_s2 = inlined_call_operand.vmem [shape: f32[1,4], index: 2, kind: input, shape index: {}]   ;;  %s2360_s3 = inlined_call_operand.vmem [shape: f32[8,4], index: 3, kind: input, shape index: {}]   ;;  %s2361_s4 = inlined_call_operand.vmem [shape: f32[8,1], index: 4, kind: input, shape index: {}]   ;;  %s2362_s5 = inlined_call_operand.vmem [shape: f32[8,4], index: 5, kind: input, shape index: {}]   ;;  %s2363_s6 = inlined_call_operand.vmem [shape: f32[1,4], index: 6, kind: input, shape index: {}]   ;;  %s2364_s7 = inlined_call_operand.vmem [shape: f32[8,4], index: 7, kind: input, shape index: {}]   ;;  %s2365_s8 = inlined_call_operand.vmem [shape: f32[8,1], index: 8, kind: input, shape index: {}]   ;;  %s2366_s9 = inlined_call_operand.vmem [shape: f32[7,14,1], index: 9, kind: input, shape index: {}]   ;;  %s2367_s10 = inlined_call_operand.<no memory space> [shape: f32[1], index: 10, kind: input, shape index: {}]   ;;  %s2368_s11 = inlined_call_operand.hbm [shape: f32[2,8,256], index: 11, kind: output, shape index: {}]  }
   0x1   :  { %16 = sst [smem:[#allocation3]] %s2367_s10 }
   0x2   :  { %17 = vsyncpa [#allocation5], 0 }
   0x3   :  { %19 = vsyncpa [#allocation5 + $0x1], 0  ;;  %s1731_s19 = smov 0   ;;  %s1733_s20 = smov 0  }
   0x4   :  { %s1735_s21 = smov 0   ;;  %s1737_s22 = smov 0  }
   0x5 LB: > { %s1752_s10 = sadd.s32 4294967295, %s1652_s22   ;;  %s1480_s23 = sadd.s32 4294967294, %s1652_s22   ;;  %s1652_s22 = sphi %s1737_s22, %s2406_s22   ;;  %s1648_s21 = sphi %s1735_s21, %s2405_s21   ;;  %s1644_s20 = sphi %s1733_s20, %s2404_s20   ;;  %s1640_s19 = sphi %s1731_s19, %s2403_s19  }
   0x6   : > { %s1756_s24 = sadd.s32 1, %s1652_s22   ;;  %s268_s25 = sadd.s32 1, %s1648_s21 }
   0x7   : > { %s265_s26 = ssub.s32 %s1652_s22, %s1756_s24  ;;  %p278_p0 = scmp.ne.s32.totalorder %s1648_s21, %s1644_s20 }
   0x8   : > { %p266_p1 = scmp.eq.s32.totalorder %s265_s26, 0  ;;  %p279_p2 = scmp.eq.s32.totalorder %s1752_s10, 1 }
   0x9   : > { %p284_p3 = scmp.ne.s32.totalorder %s1644_s20, %s1640_s19  ;;  %p285_p4 = scmp.eq.s32.totalorder %s1480_s23, 1 }
   0xa   : > { %s1767_s27 = scalar_select %p266_p1, %s1648_s21, %s268_s25  }
   0xb   : > { %p1769_p5 = por %p279_p2, %p278_p0  ;;  %p1773_p6 = por %p285_p4, %p284_p3 }
   0xc   : > { %p1483_p7 = scmp.ge.s32.totalorder %s1652_s22, 1  ;;  %p341_p8 = scmp.lt.s32.totalorder %s1652_s22, 3 }
   0xe   : > { %p342_p9 = pnand %p1483_p7, %p341_p8 }
   0xf   : > { %p381_p10 = scmp.lt.s32.totalorder (!%p342_p9), %s1752_s10, 1  ;;  %v425_v4 = vld [vmem:[%s2362_s5] sm:$0xff] (!%p342_p9)  ;;  %vm397_vm0 = vcmask (!%p342_p9), 31744   ;;  %v409_v19 = vlaneseq (!%p342_p9)  ;;  %v1654_v42 = vmov (!%p342_p9), 0   ;;  %v1495_v62 = vld [vmem:[%s2366_s9 + $0x38] sm:$0x3f] (!%p342_p9) }
  0x10   : > { %345 = sbr.rel (%p342_p9) target bundleno = 1151 (0x47f), region = 64  ;;  %v395_v7 = vld [vmem:[%s2358_s1] sm:$0xff] (!%p342_p9)  ;;  %1564 = vset.pattern.permute.xlu0 (!%p342_p9), %v1654_v42  ;;  %1565 = vset.pattern.permute.xlu1 (!%p342_p9), %v1654_v42  ;;  %v1498_v63 = vld [vmem:[%s2366_s9 + $0x50] sm:$0xff] (!%p342_p9)  ;;  %vm2372_vm1 = vcmask (!%p342_p9), 23552   ;;  %vm505_vm2 = vcmask (!%p342_p9), 1048552   ;;  %vm503_vm3 = vcmask (!%p342_p9), 21504  }
  0x11   : > { %v434_v23 = vld [vmem:[%s2363_s6] sm:$0x1] (!%p342_p9)  ;;  %v1804_v25 = vshrl.u32 (!%p342_p9), %v409_v19, 7  ;;  %vm508_vm4 = vcmask (!%p342_p9), 1046504   ;;  %s1657_s14 = smov (!%p342_p9), 3   ;;  %s1659_s16 = smov (!%p342_p9), 2  }
  0x12   : > { %v405_v27 = vld [vmem:[%s2359_s2] sm:$0x1] (!%p342_p9)  ;;  %s1660_s17 = smov (!%p342_p9), 126   ;;  %s1662_s23 = smov (!%p342_p9), 125  }
  0x13   : > { %v1810_v31 = vsub.s32 (!%p342_p9), 0, %v1804_v25  ;;  %v408_v34 = vld [vmem:[%s2360_s3] sm:$0xff] (!%p342_p9)  ;;  %s1663_s25 = smov (!%p342_p9), 112   ;;  %s1664_s26 = smov (!%p342_p9), 96  }
  0x14   : > { %v437_v37 = vld [vmem:[%s2364_s7] sm:$0xff] (!%p342_p9)  ;;  %s1354_s18 = sld [smem:[#allocation3]] (!%p342_p9) }
  0x15   : > { %v417_v43 = vld [vmem:[%s2361_s4] sm:$0xff] (!%p342_p9) }
  0x16   : > { %v446_v46 = vld [vmem:[%s2365_s8] sm:$0xff] (!%p342_p9) }
  0x17   : > { %s382_s30 = scalar_select %p381_p10, %s1752_s10, 1 }
  0x19   : > { %s1510_s12 = sshll.u32 %s382_s30, 4  ;;  %s1661_s30 = smov 127  }
  0x1a   : > { %s385_s15 = scalar_lea.vmem %s2357_s0, %s1510_s12 }
  0x1b   : > { %v1784_v0 = vld [vmem:[%s385_s15] sm:$0xff]  ;;  %v1786_v1 = vld [vmem:[%s385_s15 + $0x8] sm:$0xff]  ;;  %s1658_s15 = smov 1  }
  0x1c   : > { %v391_v2 = vadd.f32 %v1786_v1, %v1784_v0  ;;  %v388_v3 = vmax.f32 %v1784_v0, %v1786_v1 }
  0x1e   : > { %392 = vadd.xlane.f32.xlu0 %v391_v2  ;;  %v1655_v2 = vmov 0.0  }
  0x1f   : > { %501 = vst.msk [vmem:[#allocation2 + $0x8] sm:$0xff] %vm2372_vm1, %v1655_v2  ;;  %507 = vst [vmem:[#allocation2 + $0x18] sm:$0xff] %v1655_v2 }
  0x20   : > { %506 = vst.msk [vmem:[#allocation2 + $0x10] sm:$0xff] %vm505_vm2, %v1655_v2  ;;  %499 = vst [vmem:[#allocation2] sm:$0xff] %v1655_v2  ;;  %vm629_vm2 = vcmp.lt.s32.totalorder %v409_v19, 256 }
  0x21   : > { %502 = vst [vmem:[#allocation2 + $0x20] sm:$0x3f] %v1655_v2  ;;  %510 = vst [vmem:[#allocation2 + $0x38] sm:$0x3f] %v1655_v2 }
  0x22   : > { %389 = vmax.xlane.f32.xlu0 %v388_v3  ;;  %504 = vst.msk [vmem:[#allocation2 + $0x28] sm:$0x3f] %vm503_vm3, %v1655_v2  ;;  %v495_v3 = vand.u32 127, %v409_v19  ;;  %vm2005_vm3 = vcmp.ge.s32.totalorder %v409_v19, 3 }
  0x23   : > { %509 = vst.msk [vmem:[#allocation2 + $0x30] sm:$0x3f] %vm508_vm4, %v1655_v2  ;;  %vm2010_vm4 = vcmp.lt.s32.totalorder %v409_v19, 259 }
  0xab   : > { %v393_v5 = vpop.xlane.xlu0 %392 }
  0xac   : > { %v394_v6 = vmul.f32 0.00390625, %v393_v5 }
  0xae   : > { %v426_v8 = vmul.f32 %v425_v4, %v394_v6 }
  0xaf   : > { %v390_v9 = vpop.xlane.xlu0 %389 }
  0xb0   : > { %v427_v10 = vsel %vm397_vm0, %v426_v8, 0.0  ;;  %v396_v11 = vmul.f32 %v395_v7, %v390_v9  ;;  %v1656_v7 = vmov 1966171168   ;;  %v496_v9 = vadd.s32 128, %v495_v3 }
  0xb1   : > { %v428_v12 = vrot.slane %v427_v10, 4  ;;  %v519_v8 = vunpack.c.l.s4 %v1656_v7 }
  0xb2   : > { %v398_v13 = vsel %vm397_vm0, %v396_v11, 0.0 }
  0xb3   : > { %v429_v14 = vadd.f32 %v428_v12, %v427_v10  ;;  %v399_v15 = vrot.slane %v398_v13, 4 }
  0xb5   : > { %v400_v16 = vadd.f32 %v399_v15, %v398_v13  ;;  %v430_v17 = vrot.slane %v429_v14, 2 }
  0xb7   : > { %v401_v18 = vrot.slane %v400_v16, 2  ;;  %v431_v20 = vadd.f32 %v430_v17, %v429_v14 }
  0xb9   : > { %v402_v21 = vadd.f32 %v401_v18, %v400_v16  ;;  %v432_v22 = vrot.slane %v431_v20, 1  ;;  %v1848_v16 = vand.u32 15, %v495_v3 }
  0xbb   : > { %v403_v24 = vrot.slane %v402_v21, 1  ;;  %v433_v26 = vadd.f32 %v432_v22, %v431_v20  ;;  %vm511_vm5 = vcmp.lt.s32.totalorder %v1848_v16, 13  ;;  %vm577_vm7 = vcmp.lt.s32.totalorder %v1848_v16, 15 }
  0xbc   : > { %vm544_vm9 = vcmp.lt.s32.totalorder %v1848_v16, 14  ;;  %vm667_vm11 = vcmp.ge.s32.totalorder %v1848_v16, 2  ;;  %vm634_vm13 = vcmp.ge.s32.totalorder %v1848_v16, 1  ;;  %vm700_vm15 = vcmp.ge.s32.totalorder %v1848_v16, 3 }
  0xbd   : > { %v404_v28 = vadd.f32 %v403_v24, %v402_v21  ;;  %v435_v29 = vadd.f32 %v434_v23, %v433_v26 }
  0xbf   : > { %v406_v30 = vadd.f32 %v405_v27, %v404_v28  ;;  %v436_v32 = vmax.f32 %v435_v29, 0.0 }
  0xc1   : > { %v407_v33 = vmax.f32 %v406_v30, 0.0  ;;  %v441_v36 = vrot.slane %v436_v32, %v1810_v31 }
  0xc3   : > { %v412_v35 = vrot.slane %v407_v33, %v1810_v31  ;;  %v442_v40 = vmul.f32 %v441_v36, %v437_v37 }
  0xc5   : > { %v413_v38 = vmul.f32 %v412_v35, %v408_v34  ;;  %v443_v41 = vsel %vm397_vm0, %v442_v40, 0.0 }
  0xc7   : > { %v414_v39 = vsel %vm397_vm0, %v413_v38, 0.0 }
  0xc8   : > { %415 = vadd.xlane.f32.xlu1 %v414_v39 }
  0xcc   : > { %444 = vadd.xlane.f32.xlu1 %v443_v41 }
  0xdd   : > { %1162 = vperm.xlu1 %1565, %v1498_v63  }
 0x155   : > { %v416_v44 = vpop.xlane.xlu1 %415 }
 0x156   : > { %v418_v45 = vadd.f32 %v417_v43, %v416_v44 }
 0x158   : > { %v1487_v47 = vmul.f32 -1.442695, %v418_v45 }
 0x159   : > { %v445_v48 = vpop.xlane.xlu1 %444 }
 0x15a   : > { %1566 = vpow2.f32 %v1487_v47  ;;  %v447_v49 = vadd.f32 %v446_v46, %v445_v48 }
 0x15c   : > { %v1488_v50 = vmul.f32 -1.442695, %v447_v49 }
 0x15e   : > { %1568 = vpow2.f32 %v1488_v50 }
 0x164   : > { %v1567_v51 = vpop.eup %1566 }
 0x165   : > { %v422_v52 = vadd.f32 1.0, %v1567_v51 }
 0x167   : > { %1570 = vrcp.f32 %v422_v52 }
 0x168   : > { %v1569_v53 = vpop.eup %1568 }
 0x169   : > { %v451_v54 = vadd.f32 1.0, %v1569_v53 }
 0x16b   : > { %1572 = vrcp.f32 %v451_v54 }
 0x171   : > { %v1571_v55 = vpop.eup %1570 }
 0x175   : > { %v1573_v56 = vpop.eup %1572 }
 0x176   : > { %v454_v57 = vadd.f32 %v1573_v56, %v1571_v55 }
 0x178   : > { %v1489_v58 = vmul.f32 -1.442695, %v454_v57 }
 0x17a   : > { %1574 = vpow2.f32 %v1489_v58 }
 0x184   : > { %v1575_v59 = vpop.eup %1574 }
 0x185   : > { %v458_v60 = vadd.f32 1.0, %v1575_v59 }
 0x187   : > { %1576 = vrcp.f32 %v458_v60 }
 0x191   : > { %v1577_v61 = vpop.eup %1576 }
 0x192   : > { %463 = vperm.xlu0 %1564, %v1577_v61  }
 0x196   : > { %1079 = vperm.xlu0 %1564, %v1495_v62  }
 0x211   : > { %v464_v4 = vpop.permute.xlu0 %463 }
 0x212   : > { %v1837_v5 = vmul.f32 %v464_v4, %v1784_v0  ;;  %v1840_v6 = vmul.f32 %v464_v4, %v1786_v1  ;;  %v520_v0 = vunpack.c.0.s8 %v519_v8  ;;  %v1850_v1 = vand.u32 15, %v496_v9 }
 0x214   : > { %v468_v10 = vrot.slane %v1837_v5, 4  ;;  %v474_v11 = vrot.slane %v1840_v6, 4  ;;  %v1853_v27 = vsub.s32 %v520_v0, %v1804_v25  ;;  %vm512_vm6 = vcmp.lt.s32.totalorder %v1850_v1, 13 }
 0x215   : > { %vm578_vm8 = vcmp.lt.s32.totalorder %v1850_v1, 15  ;;  %vm545_vm10 = vcmp.lt.s32.totalorder %v1850_v1, 14  ;;  %vm668_vm12 = vcmp.ge.s32.totalorder %v1850_v1, 2  ;;  %vm635_vm14 = vcmp.ge.s32.totalorder %v1850_v1, 1 }
 0x216   : > { %v469_v12 = vmax.f32 %v1837_v5, %v468_v10  ;;  %v475_v13 = vmax.f32 %v1840_v6, %v474_v11  ;;  %v481_v14 = vadd.f32 %v468_v10, %v1837_v5  ;;  %v487_v15 = vadd.f32 %v474_v11, %v1840_v6  ;;  %v1499_v11 = vld [vmem:[%s2366_s9 + $0x58] sm:$0x3f] }
 0x217   : > { %vm701_vm0 = vcmp.ge.s32.totalorder %v1850_v1, 3  ;;  %v1494_v1 = vld [vmem:[%s2366_s9 + $0x30] sm:$0xff] }
 0x218   : > { %v470_v17 = vrot.slane %v469_v12, 2  ;;  %v476_v18 = vrot.slane %v475_v13, 2  ;;  %v482_v20 = vrot.slane %v481_v14, 2  ;;  %v488_v21 = vrot.slane %v487_v15, 2 }
 0x21a   : > { %v471_v22 = vmax.f32 %v469_v12, %v470_v17  ;;  %v477_v23 = vmax.f32 %v475_v13, %v476_v18  ;;  %v483_v24 = vadd.f32 %v482_v20, %v481_v14  ;;  %v489_v26 = vadd.f32 %v488_v21, %v487_v15 }
 0x21c   : > { %v472_v28 = vrot.slane %v471_v22, 1  ;;  %v478_v29 = vrot.slane %v477_v23, 1  ;;  %v484_v30 = vrot.slane %v483_v24, 1  ;;  %v490_v32 = vrot.slane %v489_v26, 1 }
 0x21e   : > { %v473_v33 = vmax.f32 %v471_v22, %v472_v28  ;;  %v479_v34 = vmax.f32 %v477_v23, %v478_v29  ;;  %v485_v25 = vadd.f32 %v484_v30, %v483_v24  ;;  %v491_v35 = vadd.f32 %v490_v32, %v489_v26  ;;  %v1500_v22 = vld [vmem:[%s2366_s9 + $0x60] sm:$0xff]  ;;  %v1490_v32 = vld [vmem:[%s2366_s9 + $0x10] sm:$0xff] }
 0x220   : > { %v1865_v36 = vmul.f32 0.125, %v485_v25  ;;  %v1867_v37 = vmul.f32 0.125, %v491_v35  ;;  %v513_v38 = vsel %vm511_vm5, %v473_v33, 0.0  ;;  %v514_v39 = vsel %vm512_vm6, %v479_v34, 0.0 }
 0x221   : > { %v517_v40 = vcombine.low %v513_v38, %v514_v39  ;;  %v546_v41 = vsel %vm544_vm9, %v473_v33, 0.0  ;;  %v547_v42 = vsel %vm545_vm10, %v479_v34, 0.0  ;;  %v579_v43 = vsel %vm577_vm7, %v473_v33, 0.0  ;;  %v1492_v39 = vld [vmem:[%s2366_s9 + $0x20] sm:$0xff] }
 0x222   : > { %v787_v44 = vsel %vm577_vm7, %v1865_v36, 0.0  ;;  %v788_v45 = vsel %vm578_vm8, %v1867_v37, 0.0  ;;  %v550_v46 = vcombine.low %v546_v41, %v547_v42  ;;  %v862_v47 = vsel %vm667_vm11, %v1865_v36, 0.0  ;;  %vm2370_vm7 = vmand %vm2005_vm3, %vm2010_vm4 }
 0x223   : > { %v524_v48 = vrot.slane %v517_v40, %v1853_v27  ;;  %v791_v49 = vcombine.low %v787_v44, %v788_v45  ;;  %v863_v50 = vsel %vm668_vm12, %v1867_v37, 0.0  ;;  %v580_v51 = vsel %vm578_vm8, %v479_v34, 0.0  ;;  %v1496_v45 = vld [vmem:[%s2366_s9 + $0x40] sm:$0xff] }
 0x224   : > { %v866_v52 = vcombine.low %v862_v47, %v863_v50  ;;  %v557_v55 = vrot.slane %v550_v46, %v1853_v27  ;;  %v583_v56 = vcombine.low %v579_v43, %v580_v51  ;;  %v636_v57 = vsel %vm634_vm13, %v473_v33, 0.0 }
 0x225   : > { %v531_v53 = vrot.slane %v524_v48, %v1853_v27  ;;  %v798_v54 = vrot.slane %v791_v49, %v1853_v27  ;;  %v637_v58 = vsel %vm635_vm14, %v479_v34, 0.0  ;;  %v669_v2 = vsel %vm667_vm11, %v473_v33, 0.0 }
 0x226   : > { %v873_v60 = vrot.slane %v866_v52, %v1853_v27  ;;  %v564_v61 = vrot.slane %v557_v55, %v1853_v27  ;;  %v590_v62 = vrot.slane %v583_v56, %v1853_v27  ;;  %v640_v63 = vcombine.low %v636_v57, %v637_v58  ;;  %v2002_v55 = vpop.permute.xlu0 %1079 }
 0x227   : > { %532 = vrot.lane.b32.xlu1 %v531_v53, %s1657_s14  ;;  %v805_v59 = vrot.slane %v798_v54, %v1853_v27  ;;  %v670_v3 = vsel %vm668_vm12, %v479_v34, 0.0  ;;  %v612_v10 = vcombine.low %v473_v33, %v479_v34  ;;  %v702_v12 = vsel %vm700_vm15, %v473_v33, 0.0  ;;  %v1497_v53 = vld [vmem:[%s2366_s9 + $0x48] sm:$0x3f]  ;;  %v2000_v54 = vpop.permute.xlu1 %1162 }
 0x228   : > { %v880_v4 = vrot.slane %v873_v60, %v1853_v27  ;;  %v597_v7 = vrot.slane %v590_v62, %v1853_v27  ;;  %v647_v8 = vrot.slane %v640_v63, %v1853_v27  ;;  %v673_v9 = vcombine.low %v669_v2, %v670_v3 }
 0x229   : > { %806 = vrot.lane.b32.xlu0 %v805_v59, %s1658_s15  ;;  %v703_v13 = vsel %vm701_vm0, %v479_v34, 0.0  ;;  %v816_v14 = vcombine.low %v1865_v36, %v1867_v37  ;;  %v619_v15 = vrot.slane %v612_v10, %v1853_v27  ;;  %v733_v23 = vsel %vm511_vm5, %v1865_v36, 0.0 }
 0x22a   : > { %v654_v17 = vrot.slane %v647_v8, %v1853_v27  ;;  %v680_v18 = vrot.slane %v673_v9, %v1853_v27  ;;  %v706_v20 = vcombine.low %v702_v12, %v703_v13  ;;  %v734_v24 = vsel %vm512_vm6, %v1867_v37, 0.0 }
 0x22b   : > { %565 = vrot.lane.b32.xlu1 %v564_v61, %s1659_s16  ;;  %v823_v0 = vrot.slane %v816_v14, %v1853_v27  ;;  %v626_v21 = vrot.slane %v619_v15, %v1853_v27  ;;  %v737_v30 = vcombine.low %v733_v23, %v734_v24  ;;  %v760_v33 = vsel %vm544_vm9, %v1865_v36, 0.0 }
 0x22c   : > { %v687_v28 = vrot.slane %v680_v18, %v1853_v27  ;;  %v713_v29 = vrot.slane %v706_v20, %v1853_v27  ;;  %v761_v34 = vsel %vm545_vm10, %v1867_v37, 0.0  ;;  %v835_v40 = vsel %vm634_vm13, %v1865_v36, 0.0 }
 0x22d   : > { %881 = vrot.lane.b32.xlu0 %v880_v4, %s1660_s17  ;;  %v830_v26 = vrot.slane %v823_v0, %v1853_v27  ;;  %632 = vst.msk [vmem:[#allocation2 + $0xb] ss:$8 sm:$0x3] %vm629_vm2, %v626_v21  ;;  %v744_v35 = vrot.slane %v737_v30, %v1853_v27  ;;  %v764_v38 = vcombine.low %v760_v33, %v761_v34  ;;  %v836_v41 = vsel %vm635_vm14, %v1867_v37, 0.0 }
 0x22e   : > { %v720_v25 = vrot.slane %v713_v29, %v1853_v27  ;;  %v839_v44 = vcombine.low %v835_v40, %v836_v41  ;;  %v889_v46 = vsel %vm700_vm15, %v1865_v36, 0.0  ;;  %v890_v47 = vsel %vm701_vm0, %v1867_v37, 0.0  ;;  %v1501_v36 = vld [vmem:[%s2366_s9 + $0x68] sm:$0x3f]  ;;  %v1491_v37 = vld [vmem:[%s2366_s9 + $0x18] sm:$0x3f] }
 0x22f   : > { %598 = vrot.lane.b32.xlu1 %v597_v7, %s1658_s15  ;;  %833 = vst.msk [vmem:[#allocation2 + $0x2a] ss:$8 sm:$0x3] %vm629_vm2, %v830_v26  ;;  %v751_v42 = vrot.slane %v744_v35, %v1853_v27  ;;  %v771_v43 = vrot.slane %v764_v38, %v1853_v27  ;;  %v893_v50 = vcombine.low %v889_v46, %v890_v47  ;;  %vm2015_vm5 = vcmp.ge.s32.totalorder %v409_v19, 1  ;;  %s1665_s15 = smov 64  }
 0x230   : > { %v846_v49 = vrot.slane %v839_v44, %v1853_v27  ;;  %vm2020_vm6 = vcmp.lt.s32.totalorder %v409_v19, 257  ;;  %vm601_vm8 = vcmask 7168   ;;  %vm2029_vm9 = vcmp.ge.s32.totalorder %v409_v19, 2 }
 0x231   : > { %1167 = vperm.xlu0 %1564, %v1499_v11   ;;  %v778_v48 = vrot.slane %v771_v43, %v1853_v27  ;;  %v900_v52 = vrot.slane %v893_v50, %v1853_v27  ;;  %vm2034_vm10 = vcmp.lt.s32.totalorder %v409_v19, 258  ;;  %vm606_vm11 = vmand %vm2015_vm5, %vm2020_vm6  ;;  %vm2369_vm12 = vcmask 15360  }
 0x232   : > { %v853_v51 = vrot.slane %v846_v49, %v1853_v27  ;;  %vm2049_vm13 = vcmp.ge.s32.totalorder %v409_v19, 126  ;;  %vm2054_vm14 = vcmp.lt.s32.totalorder %v409_v19, 382  ;;  %vm2371_vm15 = vmand %vm2029_vm9, %vm2034_vm10  ;;  %vm691_vm0 = vcmask 1031168  }
 0x233   : > { %655 = vrot.lane.b32.xlu1 %v654_v17, %s1661_s30  ;;  %v907_v16 = vrot.slane %v900_v52, %v1853_v27  ;;  %v1493_v27 = vld [vmem:[%s2366_s9 + $0x28] sm:$0x3f]  ;;  %vm696_vm2 = vmand %vm2049_vm13, %vm2054_vm14  ;;  %vm2111_vm5 = vcmp.ge.s32.totalorder %v409_v19, 125  ;;  %vm2116_vm6 = vcmp.lt.s32.totalorder %v409_v19, 381  ;;  %vm2399_vm13 = vcmask 23552  }
 0x234   : > { %vm2400_vm14 = vmand %vm2005_vm3, %vm2010_vm4  ;;  %vm1197_vm3 = vcmask 259072   ;;  %vm1176_vm4 = vcmask 1047808  }
 0x235   : > { %1211 = vperm.xlu0 %1564, %v1500_v22  }
 0x237   : > { %688 = vrot.lane.b32.xlu1 %v687_v28, %s1660_s17 }
 0x239   : > { %976 = vperm.xlu0 %1564, %v1490_v32  }
 0x23b   : > { %721 = vrot.lane.b32.xlu1 %v720_v25, %s1662_s23 }
 0x23d   : > { %1025 = vperm.xlu0 %1564, %v1492_v39  }
 0x23f   : > { %752 = vrot.lane.b32.xlu1 %v751_v42, %s1657_s14 }
 0x241   : > { %1113 = vperm.xlu0 %1564, %v1496_v45  }
 0x243   : > { %779 = vrot.lane.b32.xlu1 %v778_v48, %s1659_s16 }
 0x247   : > { %854 = vrot.lane.b32.xlu1 %v853_v51, %s1661_s30  ;;  %s1666_s30 = smov 48  }
 0x24b   : > { %908 = vrot.lane.b32.xlu1 %v907_v16, %s1662_s23  ;;  %s378_s23 = sand.u32 1, %s1644_s20  }
 0x24c   : > { %s1484_s17 = sshll.u32 %s378_s23, 4 }
 0x24f   : > { %1074 = vperm.xlu1 %1565, %v1494_v1  }
 0x253   : > { %1216 = vperm.xlu1 %1565, %v1501_v36  }
 0x257   : > { %981 = vperm.xlu1 %1565, %v1491_v37  }
 0x25b   : > { %1030 = vperm.xlu1 %1565, %v1493_v27  }
 0x25f   : > { %1118 = vperm.xlu1 %1565, %v1497_v53  }
 0x299   : > { %v533_v58 = vpop.permute.xlu1 %532 }
 0x29a   : > { %v534_v61 = vrot.slane %v533_v58, 7 }
 0x29b   : > { %v807_v62 = vpop.permute.xlu0 %806 }
 0x29c   : > { %v535_v3 = vsel %vm2372_vm1, %v534_v61, %v533_v58  ;;  %v808_v4 = vrot.slane %v807_v62, 7 }
 0x29d   : > { %542 = vst.msk [vmem:[#allocation2 + $0x8] ss:$8 sm:$0x7] %vm2370_vm7, %v535_v3  ;;  %v566_v7 = vpop.permute.xlu1 %565  ;;  %vm2090_vm7 = vcmp.lt.s32.totalorder %v409_v19, 383 }
 0x29e   : > { %v809_v10 = vsel %vm601_vm8, %v808_v4, %v807_v62  ;;  %v567_v11 = vrot.slane %v566_v7, 7 }
 0x29f   : > { %812 = vst.msk [vmem:[#allocation2 + $0x29] ss:$8 sm:$0x7] %vm606_vm11, %v809_v10  ;;  %v882_v12 = vpop.permute.xlu0 %881 }
 0x2a0   : > { %v569_v13 = vsel %vm2369_vm12, %v567_v11, %v566_v7  ;;  %v883_v14 = vrot.slane %v882_v12, 7  ;;  %vm2085_vm12 = vcmp.ge.s32.totalorder %v409_v19, 127 }
 0x2a1   : > { %575 = vst.msk [vmem:[#allocation2 + $0x9] ss:$8 sm:$0x7] %vm2371_vm15, %v569_v13  ;;  %v599_v15 = vpop.permute.xlu1 %598  ;;  %vm658_vm15 = vcmask 1039360   ;;  %vm663_vm1 = vmand %vm2085_vm12, %vm2090_vm7  ;;  %vm1195_vm7 = vcmask 261120   ;;  %vm1178_vm12 = vcmask 1045760  }
 0x2a2   : > { %v884_v0 = vsel %vm691_vm0, %v883_v14, %v882_v12  ;;  %v600_v17 = vrot.slane %v599_v15, 7 }
 0x2a3   : > { %887 = vst.msk [vmem:[#allocation2 + $0x24] ss:$8 sm:$0x7] %vm696_vm2, %v884_v0 }
 0x2a4   : > { %v602_v21 = vsel %vm601_vm8, %v600_v17, %v599_v15  ;;  %vm724_vm8 = vcmask 1022976  }
 0x2a5   : > { %608 = vst.msk [vmem:[#allocation2 + $0xa] ss:$8 sm:$0x7] %vm606_vm11, %v602_v21  ;;  %v656_v22 = vpop.permute.xlu1 %655  ;;  %vm729_vm11 = vmand %vm2111_vm5, %vm2116_vm6  ;;  %vm1227_vm5 = vcmask 1045888   ;;  %vm1246_vm6 = vcmask 390144  }
 0x2a6   : > { %v657_v23 = vrot.slane %v656_v22, 7 }
 0x2a8   : > { %v659_v24 = vsel %vm658_vm15, %v657_v23, %v656_v22 }
 0x2a9   : > { %665 = vst.msk [vmem:[#allocation2 + $0x4] ss:$8 sm:$0x7] %vm663_vm1, %v659_v24  ;;  %v689_v26 = vpop.permute.xlu1 %688 }
 0x2aa   : > { %v690_v28 = vrot.slane %v689_v26, 7 }
 0x2ac   : > { %v692_v32 = vsel %vm691_vm0, %v690_v28, %v689_v26  ;;  %vm2401_vm0 = vcmask 15360  }
 0x2ad   : > { %698 = vst.msk [vmem:[#allocation2 + $0x5] ss:$8 sm:$0x7] %vm696_vm2, %v692_v32  ;;  %v722_v33 = vpop.permute.xlu1 %721  ;;  %vm2402_vm2 = vmand %vm2029_vm9, %vm2034_vm10  ;;  %vm1225_vm9 = vcmask 1047936   ;;  %vm1244_vm10 = vcmask 392192  }
 0x2ae   : > { %v723_v34 = vrot.slane %v722_v33, 7 }
 0x2b0   : > { %v725_v19 = vsel %vm724_vm8, %v723_v34, %v722_v33  ;;  %v1168_v47 = vpop.permute.xlu0 %1167 }
 0x2b1   : > { %731 = vst.msk [vmem:[#allocation2 + $0x6] ss:$8 sm:$0x7] %vm729_vm11, %v725_v19  ;;  %v753_v25 = vpop.permute.xlu1 %752 }
 0x2b2   : > { %v754_v35 = vrot.slane %v753_v25, 7 }
 0x2b4   : > { %v755_v38 = vsel %vm2399_vm13, %v754_v35, %v753_v25  ;;  %v1212_v49 = vpop.permute.xlu0 %1211  ;;  %vm1011_vm13 = vcmask 783360  }
 0x2b5   : > { %758 = vst.msk [vmem:[#allocation2 + $0xf] ss:$8 sm:$0x7] %vm2400_vm14, %v755_v38  ;;  %v780_v39 = vpop.permute.xlu1 %779  ;;  %vm1009_vm14 = vcmask 785408  }
 0x2b6   : > { %v781_v40 = vrot.slane %v780_v39, 7 }
 0x2b8   : > { %v782_v41 = vsel %vm2401_vm0, %v781_v40, %v780_v39  ;;  %v2186_v61 = vpop.permute.xlu0 %976  ;;  %v2196_v14 = vld [vmem:[#allocation2] sm:$0xff]  ;;  %vm1148_vm0 = vcmask 128000  }
 0x2b9   : > { %785 = vst.msk [vmem:[#allocation2 + $0x28] ss:$8 sm:$0x7] %vm2402_vm2, %v782_v41  ;;  %v855_v42 = vpop.permute.xlu1 %854  ;;  %vm1041_vm2 = vcmask 1046400  }
 0x2ba   : > { %v856_v43 = vrot.slane %v855_v42, 7 }
 0x2bc   : > { %v857_v44 = vsel %vm658_vm15, %v856_v43, %v855_v42  ;;  %v2162_v51 = vld [vmem:[#allocation2 + $0x18] sm:$0xff]  ;;  %v2164_v52 = vld [vmem:[#allocation2 + $0x10] sm:$0xff]  ;;  %v2182_v59 = vld [vmem:[#allocation2 + $0x8] sm:$0xff]  ;;  %vm990_vm15 = vcmask 1048320   ;;  %v2198_v21 = vpop.permute.xlu0 %1025 }
 0x2bd   : > { %860 = vst.msk [vmem:[#allocation2 + $0x23] ss:$8 sm:$0x7] %vm663_vm1, %v857_v44  ;;  %v909_v45 = vpop.permute.xlu1 %908  ;;  %vm951_vm1 = vcmask 1045504   ;;  %v1172_v56 = vmul.f32 %v2000_v54, %v2162_v51  ;;  %v1171_v60 = vmul.f32 %v2000_v54, %v2164_v52  ;;  %v1170_v13 = vmul.f32 %v2000_v54, %v2182_v59 }
 0x2be   : > { %v910_v46 = vrot.slane %v909_v45, 7  ;;  %v984_v54 = vmul.f32 %v2186_v61, %v2196_v14  ;;  %v1219_v33 = vmul.f32 %v1212_v49, %v2182_v59  ;;  %v1221_v34 = vmul.f32 %v1212_v49, %v2162_v51 }
 0x2bf   : > { %v1196_v10 = vsel %vm1195_vm7, %v1172_v56, 0.0  ;;  %v1177_v32 = vsel %vm1176_vm4, %v1170_v13, 0.0  ;;  %v1220_v35 = vmul.f32 %v1212_v49, %v2164_v52  ;;  %vm1060_vm4 = vcmask 914432  }
 0x2c0   : > { %v911_v48 = vsel %vm724_vm8, %v910_v46, %v909_v45  ;;  %v2160_v50 = vld [vmem:[#allocation2 + $0x38] sm:$0x3f]  ;;  %vm992_vm8 = vcmask 1046272   ;;  %v985_v45 = vmul.f32 %v2182_v59, %v2186_v61  ;;  %vm1058_vm7 = vcmask 916480  }
 0x2c1   : > { %914 = vst.msk [vmem:[#allocation2 + $0x25] ss:$8 sm:$0x7] %vm729_vm11, %v911_v48  ;;  %v1175_v36 = vmul.f32 %v1168_v47, %v2160_v50  ;;  %vm1146_vm11 = vcmask 130048  }
 0x2c3   : > { %v1198_v3 = vsel %vm1197_vm3, %v1175_v36, 0.0  ;;  %v1226_v36 = vsel %vm1225_vm9, %v1219_v33, 0.0  ;;  %vm1039_vm3 = vcmask 1048448   ;;  %vm1129_vm9 = vcmask 1045632  }
 0x2c4   : > { %v1199_v17 = vadd.f32 %v1198_v3, %v1196_v10 }
 0x2c6   : > { %v1200_v25 = vrot.slane %v1199_v17, 4 }
 0x2c8   : > { %v2166_v16 = vld [vmem:[#allocation2 + $0x28] sm:$0x3f]  ;;  %v2168_v1 = vld [vmem:[#allocation2 + $0x30] sm:$0x3f] }
 0x2c9   : > { %v1084_v37 = vmul.f32 %v2002_v55, %v2166_v16  ;;  %v1085_v27 = vmul.f32 %v2002_v55, %v2168_v1  ;;  %v2175_v53 = vld [vmem:[#allocation2 + $0x30] sm:$0x3f]  ;;  %v2179_v57 = vld [vmem:[#allocation2 + $0x28] sm:$0x3f] }
 0x2ca   : > { %v1174_v58 = vmul.f32 %v1168_v47, %v2175_v53  ;;  %v1173_v8 = vmul.f32 %v1168_v47, %v2179_v57  ;;  %v2215_v47 = vld [vmem:[#allocation2 + $0x20] sm:$0x3f] }
 0x2cb   : > { %v1086_v4 = vsel %vm951_vm1, %v1084_v37, 0.0  ;;  %v1094_v7 = vsel %vm951_vm1, %v1085_v27, 0.0  ;;  %v1245_v37 = vsel %vm1244_vm10, %v1221_v34, 0.0  ;;  %v2219_v27 = vpop.permute.xlu0 %1113 }
 0x2cc   : > { %v1187_v2 = vsel %vm951_vm1, %v1174_v58, 0.0  ;;  %v1179_v22 = vsel %vm1178_vm12, %v1173_v8, 0.0  ;;  %v1123_v10 = vmul.f32 %v2219_v27, %v2162_v51  ;;  %vm1127_vm12 = vcmask 1047680  }
 0x2cd   : > { %v1188_v9 = vadd.f32 %v1187_v2, %v1171_v60  ;;  %v1180_v40 = vadd.f32 %v1179_v22, %v1177_v32  ;;  %v1201_v60 = vadd.f32 %v1200_v25, %v1199_v17 }
 0x2ce   : > { %v1075_v55 = vpop.permute.xlu1 %1074 }
 0x2cf   : > { %v1082_v62 = vmul.f32 %v2182_v59, %v1075_v55  ;;  %v1083_v63 = vmul.f32 %v2164_v52, %v1075_v55  ;;  %v1189_v0 = vrot.slane %v1188_v9, 4  ;;  %v1181_v2 = vrot.slane %v1180_v40, 4 }
 0x2d1   : > { %v1087_v11 = vadd.f32 %v1086_v4, %v1082_v62  ;;  %v1095_v12 = vadd.f32 %v1094_v7, %v1083_v63  ;;  %v1190_v26 = vadd.f32 %v1189_v0, %v1188_v9  ;;  %v991_v9 = vsel %vm990_vm15, %v984_v54, 0.0 }
 0x2d2   : > { %v1217_v15 = vpop.permute.xlu1 %1216  ;;  %v1202_v54 = vrot.slane %v1201_v60, 2  ;;  %vm940_vm15 = vcmask 1048192  }
 0x2d3   : > { %v1088_v18 = vrot.slane %v1087_v11, 4  ;;  %v1096_v20 = vrot.slane %v1095_v12, 4  ;;  %v1222_v23 = vmul.f32 %v1217_v15, %v2179_v57  ;;  %v1223_v24 = vmul.f32 %v1217_v15, %v2175_v53 }
 0x2d4   : > { %v1224_v30 = vmul.f32 %v1217_v15, %v2160_v50  ;;  %v1191_v44 = vrot.slane %v1190_v26, 2 }
 0x2d5   : > { %v1089_v28 = vadd.f32 %v1088_v18, %v1087_v11  ;;  %v1097_v29 = vadd.f32 %v1096_v20, %v1095_v12  ;;  %v1228_v41 = vsel %vm1227_vm5, %v1222_v23, 0.0  ;;  %v1236_v42 = vsel %vm951_vm1, %v1223_v24, 0.0 }
 0x2d6   : > { %v982_v19 = vpop.permute.xlu1 %981  ;;  %v1247_v46 = vsel %vm1246_vm6, %v1224_v30, 0.0  ;;  %v1229_v55 = vadd.f32 %v1228_v41, %v1226_v36  ;;  %v1237_v62 = vadd.f32 %v1236_v42, %v1220_v35  ;;  %v1192_v8 = vadd.f32 %v1191_v44, %v1190_v26 }
 0x2d7   : > { %v1090_v38 = vrot.slane %v1089_v28, 2  ;;  %v1098_v39 = vrot.slane %v1097_v29, 2  ;;  %v988_v43 = vmul.f32 %v982_v19, %v2166_v16  ;;  %v987_v56 = vmul.f32 %v982_v19, %v2215_v47 }
 0x2d8   : > { %v1248_v3 = vadd.f32 %v1247_v46, %v1245_v37  ;;  %v989_v11 = vmul.f32 %v982_v19, %v2168_v1  ;;  %v986_v12 = vmul.f32 %v2164_v52, %v2186_v61  ;;  %v1230_v18 = vrot.slane %v1229_v55, 4 }
 0x2d9   : > { %v1099_v48 = vadd.f32 %v1098_v39, %v1097_v29  ;;  %v1091_v49 = vadd.f32 %v1090_v38, %v1089_v28  ;;  %v1001_v63 = vsel %vm951_vm1, %v988_v43, 0.0  ;;  %v993_v13 = vsel %vm992_vm8, %v987_v56, 0.0 }
 0x2da   : > { %v2222_v58 = vpop.permute.xlu1 %1030  ;;  %v1002_v15 = vadd.f32 %v1001_v63, %v985_v45  ;;  %v1238_v20 = vrot.slane %v1237_v62, 4  ;;  %v1182_v23 = vadd.f32 %v1181_v2, %v1180_v40  ;;  %v1249_v24 = vrot.slane %v1248_v3, 4 }
 0x2db   : > { %v1100_v4 = vrot.slane %v1099_v48, 1  ;;  %v1092_v7 = vrot.slane %v1091_v49, 1  ;;  %v1193_v26 = vrot.slane %v1192_v8, 1  ;;  %v1147_v61 = vsel %vm1146_vm11, %v1123_v10, 0.0 }
 0x2dc   : > { %v994_v28 = vadd.f32 %v993_v13, %v991_v9  ;;  %v1012_v29 = vsel %vm1011_vm13, %v989_v11, 0.0  ;;  %v1010_v32 = vsel %vm1009_vm14, %v986_v12, 0.0  ;;  %v1003_v33 = vrot.slane %v1002_v15, 4 }
 0x2dd   : > { %v1101_v17 = vadd.f32 %v1100_v4, %v1099_v48  ;;  %v1093_v51 = vadd.f32 %v1092_v7, %v1091_v49  ;;  %v1183_v19 = vrot.slane %v1182_v23, 2  ;;  %v1231_v25 = vadd.f32 %v1230_v18, %v1229_v55  ;;  %v923_v18 = vld [vmem:[%s2366_s9 + $0x8] sm:$0x3f] }
 0x2de   : > { %v2232_v0 = vpop.permute.xlu1 %1118  ;;  %v1239_v35 = vadd.f32 %v1238_v20, %v1237_v62  ;;  %v1013_v38 = vadd.f32 %v1012_v29, %v1010_v32  ;;  %v1203_v39 = vadd.f32 %v1202_v54, %v1201_v60  ;;  %v1250_v40 = vadd.f32 %v1249_v24, %v1248_v3 }
 0x2df   : > { %v1126_v22 = vmul.f32 %v2232_v0, %v2160_v50  ;;  %1276 = vrot.lane.b32.xlu1 %v1101_v17, %s1663_s25  ;;  %1274 = vrot.lane.b32.xlu0 %v1093_v51, %s1663_s25  ;;  %v1194_v50 = vadd.f32 %v1193_v26, %v1192_v8  ;;  %v995_v41 = vrot.slane %v994_v28, 4  ;;  %v1184_v42 = vadd.f32 %v1183_v19, %v1182_v23 }
 0x2e0   : > { %v1232_v43 = vrot.slane %v1231_v25, 2  ;;  %v1240_v44 = vrot.slane %v1239_v35, 2  ;;  %v1251_v45 = vrot.slane %v1250_v40, 2  ;;  %v1004_v49 = vadd.f32 %v1003_v33, %v1002_v15 }
 0x2e1   : > { %v1149_v30 = vsel %vm1148_vm0, %v1126_v22, 0.0  ;;  %v1185_v46 = vrot.slane %v1184_v42, 1  ;;  %v1014_v36 = vrot.slane %v1013_v38, 4  ;;  %v1204_v37 = vrot.slane %v1203_v39, 1  ;;  %v922_v22 = vld [vmem:[%s2366_s9] sm:$0xff] }
 0x2e2   : > { %v2241_v34 = vadd.f32 %v1149_v30, %v1147_v61  ;;  %v1233_v48 = vadd.f32 %v1232_v43, %v1231_v25  ;;  %v1252_v56 = vadd.f32 %v1251_v45, %v1250_v40  ;;  %v1241_v55 = vadd.f32 %v1240_v44, %v1239_v35 }
 0x2e3   : > { %1307 = vrot.lane.b32.xlu1 %v1194_v50, %s1663_s25  ;;  %v1186_v63 = vadd.f32 %v1185_v46, %v1184_v42  ;;  %v996_v62 = vadd.f32 %v995_v41, %v994_v28  ;;  %v1005_v4 = vrot.slane %v1004_v49, 2  ;;  %v1205_v7 = vadd.f32 %v1204_v37, %v1203_v39 }
 0x2e4   : > { %v1234_v2 = vrot.slane %v1233_v48, 1  ;;  %v1253_v3 = vrot.slane %v1252_v56, 1  ;;  %v1242_v8 = vrot.slane %v1241_v55, 1  ;;  %v1015_v10 = vadd.f32 %v1014_v36, %v1013_v38 }
 0x2e5   : > { %1305 = vrot.lane.b32.xlu0 %v1186_v63, %s1663_s25  ;;  %v997_v9 = vrot.slane %v996_v62, 2  ;;  %v1006_v12 = vadd.f32 %v1005_v4, %v1004_v49  ;;  %v1036_v28 = vmul.f32 %v2222_v58, %v2215_v47  ;;  %v1037_v29 = vmul.f32 %v2222_v58, %v2166_v16 }
 0x2e6   : > { %v1235_v60 = vadd.f32 %v1234_v2, %v1233_v48  ;;  %v1254_v11 = vadd.f32 %v1253_v3, %v1252_v56  ;;  %v1243_v13 = vadd.f32 %v1242_v8, %v1241_v55  ;;  %v1016_v17 = vrot.slane %v1015_v10, 2 }
 0x2e7   : > { %v998_v15 = vadd.f32 %v997_v9, %v996_v62  ;;  %v1007_v20 = vrot.slane %v1006_v12, 1  ;;  %v1033_v30 = vmul.f32 %v2198_v21, %v2196_v14  ;;  %v1038_v32 = vmul.f32 %v2222_v58, %v2168_v1 }
 0x2e8   : > { %1322 = vrot.lane.b32.xlu1 %v1235_v60, %s1664_s26  ;;  %v1017_v24 = vadd.f32 %v1016_v17, %v1015_v10  ;;  %v1042_v33 = vsel %vm1041_vm2, %v1036_v28, 0.0  ;;  %v1050_v50 = vsel %vm951_vm1, %v1037_v29, 0.0  ;;  %v1034_v19 = vmul.f32 %v2182_v59, %v2198_v21 }
 0x2e9   : > { %1309 = vrot.lane.b32.xlu0 %v1205_v7, %s1663_s25  ;;  %v999_v23 = vrot.slane %v998_v15, 1  ;;  %v1008_v51 = vadd.f32 %v1007_v20, %v1006_v12  ;;  %v1035_v25 = vmul.f32 %v2164_v52, %v2198_v21  ;;  %v1040_v35 = vsel %vm1039_vm3, %v1033_v30, 0.0 }
 0x2ea   : > { %v1018_v54 = vrot.slane %v1017_v24, 1  ;;  %v1043_v38 = vadd.f32 %v1042_v33, %v1040_v35  ;;  %v1051_v39 = vadd.f32 %v1050_v50, %v1034_v19  ;;  %v1061_v40 = vsel %vm1060_vm4, %v1038_v32, 0.0 }
 0x2eb   : > { %v1000_v26 = vadd.f32 %v999_v23, %v998_v15  ;;  %v1059_v41 = vsel %vm1058_vm7, %v1035_v25, 0.0  ;;  %v1124_v48 = vmul.f32 %v2232_v0, %v2179_v57  ;;  %v1125_v49 = vmul.f32 %v2232_v0, %v2175_v53 }
 0x2ec   : > { %1326 = vrot.lane.b32.xlu1 %v1254_v11, %s1664_s26  ;;  %v1019_v61 = vadd.f32 %v1018_v54, %v1017_v24  ;;  %v1044_v42 = vrot.slane %v1043_v38, 4  ;;  %v1062_v43 = vadd.f32 %v1061_v40, %v1059_v41  ;;  %v1052_v58 = vrot.slane %v1051_v39, 4 }
 0x2ed   : > { %1324 = vrot.lane.b32.xlu0 %v1243_v13, %s1664_s26  ;;  %v1121_v21 = vmul.f32 %v2219_v27, %v2182_v59  ;;  %v1130_v56 = vsel %vm1129_vm9, %v1124_v48, 0.0  ;;  %v1138_v63 = vsel %vm951_vm1, %v1125_v49, 0.0  ;;  %v1122_v55 = vmul.f32 %v2219_v27, %v2164_v52 }
 0x2ee   : > { %v1063_v44 = vrot.slane %v1062_v43, 4  ;;  %v1045_v45 = vadd.f32 %v1044_v42, %v1043_v38  ;;  %v1053_v46 = vadd.f32 %v1052_v58, %v1051_v39  ;;  %v1151_v11 = vrot.slane %v2241_v34, 4 }
 0x2ef   : > { %v1128_v62 = vsel %vm1127_vm12, %v1121_v21, 0.0  ;;  %v1139_v57 = vadd.f32 %v1138_v63, %v1122_v55  ;;  %vm942_vm5 = vcmask 1046144   ;;  %vm960_vm6 = vcmask 654336  }
 0x2f0   : > { %931 = vperm.xlu1 %1565, %v923_v18   ;;  %v1046_v36 = vrot.slane %v1045_v45, 2  ;;  %v1064_v37 = vadd.f32 %v1063_v44, %v1062_v43  ;;  %v1054_v2 = vrot.slane %v1053_v46, 2  ;;  %v1131_v60 = vadd.f32 %v1130_v56, %v1128_v62 }
 0x2f1   : > { %926 = vperm.xlu0 %1564, %v922_v22   ;;  %v1140_v7 = vrot.slane %v1139_v57, 4  ;;  %vm962_vm8 = vcmask 652288  }
 0x2f2   : > { %v1047_v3 = vadd.f32 %v1046_v36, %v1045_v45  ;;  %v1065_v4 = vrot.slane %v1064_v37, 2  ;;  %v1055_v53 = vadd.f32 %v1054_v2, %v1053_v46  ;;  %v1132_v0 = vrot.slane %v1131_v60, 4 }
 0x2f3   : > { %v1141_v15 = vadd.f32 %v1140_v7, %v1139_v57 }
 0x2f4   : > { %1260 = vrot.lane.b32.xlu1 %v1008_v51, %s1663_s25  ;;  %v1048_v8 = vrot.slane %v1047_v3, 1  ;;  %v1066_v9 = vadd.f32 %v1065_v4, %v1064_v37  ;;  %v1056_v10 = vrot.slane %v1055_v53, 1  ;;  %v1133_v13 = vadd.f32 %v1132_v0, %v1131_v60 }
 0x2f5   : > { %1258 = vrot.lane.b32.xlu0 %v1000_v26, %s1663_s25  ;;  %v1142_v54 = vrot.slane %v1141_v15, 2 }
 0x2f6   : > { %v1049_v17 = vadd.f32 %v1048_v8, %v1047_v3  ;;  %v1067_v18 = vrot.slane %v1066_v9, 1  ;;  %v1057_v27 = vadd.f32 %v1056_v10, %v1055_v53  ;;  %v1134_v26 = vrot.slane %v1133_v13, 2 }
 0x2f7   : > { %v1143_v32 = vadd.f32 %v1142_v54, %v1141_v15 }
 0x2f8   : > { %v1068_v51 = vadd.f32 %v1067_v18, %v1066_v9  ;;  %v1135_v30 = vadd.f32 %v1134_v26, %v1133_v13 }
 0x2f9   : > { %1262 = vrot.lane.b32.xlu0 %v1019_v61, %s1663_s25  ;;  %v1152_v61 = vadd.f32 %v1151_v11, %v2241_v34  ;;  %v1144_v25 = vrot.slane %v1143_v32, 1  ;;  %s1511_s25 = sshll.u32 %s1752_s10, 8  ;;  %s1407_s10 = scalar_lea.sflag [#allocation5], %s378_s23 }
 0x2fa   : > { %v1136_v19 = vrot.slane %v1135_v30, 1  ;;  %s2315_s16 = scalar_lea.hbm %s2368_s11, %s1511_s25 }
 0x2fb   : > { %v1153_v33 = vrot.slane %v1152_v61, 2  ;;  %v1145_v42 = vadd.f32 %v1144_v25, %v1143_v32 }
 0x2fc   : > { %v1137_v34 = vadd.f32 %v1136_v19, %v1135_v30 }
 0x2fd   : > { %v1154_v35 = vadd.f32 %v1153_v33, %v1152_v61 }
 0x2ff   : > { %v1155_v43 = vrot.slane %v1154_v35, 1 }
 0x301   : > { %v1156_v21 = vadd.f32 %v1155_v43, %v1154_v35 }
 0x351   : > { %v1277_v12 = vpop.permute.xlu1 %1276  ;;  %v1275_v20 = vpop.permute.xlu0 %1274 }
 0x352   : > { %v1282_v22 = vadd.f32 %v1275_v20, %v1049_v17  ;;  %v1278_v23 = vsel %vm1058_vm7, %v1275_v20, %v1277_v12  ;;  %v1284_v28 = vadd.f32 %v1277_v12, %v1068_v51 }
 0x353   : > { %v1283_v24 = vadd.f32 %v1278_v23, %v1057_v27 }
 0x354   : > { %1288 = vrot.lane.b32.xlu1 %v1282_v22, %s1664_s26 }
 0x355   : > { %1290 = vrot.lane.b32.xlu0 %v1283_v24, %s1664_s26  ;;  %v1308_v29 = vpop.permute.xlu1 %1307 }
 0x357   : > { %v1306_v50 = vpop.permute.xlu0 %1305 }
 0x358   : > { %1292 = vrot.lane.b32.xlu1 %v1284_v28, %s1664_s26  ;;  %v1311_v40 = vsel %vm1058_vm7, %v1306_v50, %v1308_v29  ;;  %s380_s26 = scalar_lea.vmem [#allocation4], %s1484_s17 }
 0x359   : > { %v1316_v44 = vadd.f32 %v1311_v40, %v1137_v34  ;;  %s1421_s12 = sshll.u32 %s380_s26, 4  ;;  %s2317_s12 = int_to_ptr.vmem [resolvable:$true] %s1421_s12 }
 0x35a   : > { %v1323_v38 = vpop.permute.xlu1 %1322 }
 0x35b   : > { %v1310_v39 = vpop.permute.xlu0 %1309 }
 0x35c   : > { %v1312_v41 = vsel %vm1058_vm7, %v1308_v29, %v1310_v39  ;;  %v1318_v56 = vadd.f32 %v1310_v39, %v1156_v21 }
 0x35d   : > { %v1317_v45 = vadd.f32 %v1312_v41, %v1145_v42  ;;  %v1355_v42 = vstv %s1354_s18  ;;  %s1667_s18 = smov [#allocation4]  }
 0x35e   : > { %v1327_v58 = vpop.permute.xlu1 %1326 }
 0x35f   : > { %v1325_v46 = vpop.permute.xlu0 %1324  ;;  %v1335_v63 = vadd.f32 %v1327_v58, %v1318_v56 }
 0x360   : > { %v1328_v48 = vsel %vm1009_vm14, %v1323_v38, %v1325_v46  ;;  %v1329_v49 = vsel %vm1009_vm14, %v1325_v46, %v1327_v58 }
 0x361   : > { %v1333_v36 = vadd.f32 %v1328_v48, %v1316_v44  ;;  %v1334_v37 = vadd.f32 %v1329_v49, %v1317_v45 }
 0x363   : > { %1339 = vrot.lane.b32.xlu0 %v1333_v36, %s1665_s15  ;;  %1341 = vrot.lane.b32.xlu1 %v1334_v37, %s1665_s15 }
 0x367   : > { %1343 = vrot.lane.b32.xlu0 %v1335_v63, %s1665_s15  ;;  %s1590_s15 = scalar_lea.vmem %s2317_s12, 256 }
 0x368   : > { %p1591_p11 = scmp.ne.s32.totalorder %s2317_s12, %s1590_s15 }
 0x36a   : > { %p1592_p12 = pnand %p1591_p11, %p1769_p5 }
 0x36c   : > { %p1593_p13 = pneg %p1592_p12 }
 0x36f   : > { %v932_v55 = vpop.permute.xlu1 %931 }
 0x370   : > { %v927_v2 = vpop.permute.xlu0 %926  ;;  %v937_v60 = vmul.f32 %v932_v55, %v2215_v47  ;;  %v938_v57 = vmul.f32 %v932_v55, %v2166_v16  ;;  %v939_v7 = vmul.f32 %v932_v55, %v2168_v1 }
 0x371   : > { %v934_v62 = vmul.f32 %v927_v2, %v2196_v14  ;;  %v935_v3 = vmul.f32 %v2182_v59, %v927_v2  ;;  %v936_v0 = vmul.f32 %v2164_v52, %v927_v2 }
 0x372   : > { %v943_v53 = vsel %vm942_vm5, %v937_v60, 0.0  ;;  %v952_v8 = vsel %vm951_vm1, %v938_v57, 0.0  ;;  %v963_v47 = vsel %vm962_vm8, %v939_v7, 0.0  ;;  %vm1345_vm1 = vcmask 523264  }
 0x373   : > { %v941_v4 = vsel %vm940_vm15, %v934_v62, 0.0  ;;  %v953_v14 = vadd.f32 %v952_v8, %v935_v3  ;;  %v961_v10 = vsel %vm960_vm6, %v936_v0, 0.0  ;;  %v1261_v27 = vpop.permute.xlu1 %1260 }
 0x374   : > { %v944_v9 = vadd.f32 %v943_v53, %v941_v4  ;;  %v964_v13 = vadd.f32 %v963_v47, %v961_v10  ;;  %v1259_v52 = vpop.permute.xlu0 %1258 }
 0x375   : > { %v954_v12 = vrot.slane %v953_v14, 4  ;;  %v1264_v50 = vsel %vm1058_vm7, %v1259_v52, %v1261_v27 }
 0x376   : > { %v945_v11 = vrot.slane %v944_v9, 4  ;;  %v965_v59 = vrot.slane %v964_v13, 4 }
 0x377   : > { %v955_v15 = vadd.f32 %v954_v12, %v953_v14 }
 0x378   : > { %v946_v16 = vadd.f32 %v945_v11, %v944_v9  ;;  %v966_v20 = vadd.f32 %v965_v59, %v964_v13  ;;  %v1263_v26 = vpop.permute.xlu0 %1262 }
 0x379   : > { %v956_v18 = vrot.slane %v955_v15, 2  ;;  %v1265_v35 = vsel %vm1058_vm7, %v1261_v27, %v1263_v26 }
 0x37a   : > { %v947_v17 = vrot.slane %v946_v16, 2  ;;  %v967_v23 = vrot.slane %v966_v20, 2 }
 0x37b   : > { %v957_v22 = vadd.f32 %v956_v18, %v955_v15 }
 0x37c   : > { %v948_v1 = vadd.f32 %v947_v17, %v946_v16  ;;  %v968_v61 = vadd.f32 %v967_v23, %v966_v20 }
 0x37d   : > { %v958_v54 = vrot.slane %v957_v22, 1 }
 0x37e   : > { %v949_v51 = vrot.slane %v948_v1, 1  ;;  %v969_v32 = vrot.slane %v968_v61, 1 }
 0x37f   : > { %v959_v30 = vadd.f32 %v958_v54, %v957_v22 }
 0x380   : > { %v950_v28 = vadd.f32 %v949_v51, %v948_v1  ;;  %v970_v39 = vadd.f32 %v969_v32, %v968_v61 }
 0x381   : > { %v1270_v40 = vadd.f32 %v1265_v35, %v959_v30 }
 0x382   : > { %v1269_v25 = vadd.f32 %v1264_v50, %v950_v28  ;;  %v1271_v46 = vadd.f32 %v1263_v26, %v970_v39 }
 0x3c6   : > { %v1289_v24 = vpop.permute.xlu1 %1288 }
 0x3c7   : > { %v1291_v29 = vpop.permute.xlu0 %1290 }
 0x3c8   : > { %v1294_v19 = vsel %vm1009_vm14, %v1289_v24, %v1291_v29 }
 0x3c9   : > { %v1299_v41 = vadd.f32 %v1294_v19, %v1269_v25 }
 0x3ca   : > { %v1293_v33 = vpop.permute.xlu1 %1292 }
 0x3cb   : > { %v1295_v38 = vsel %vm1009_vm14, %v1291_v29, %v1293_v33  ;;  %v1301_v21 = vadd.f32 %v1293_v33, %v1271_v46 }
 0x3cc   : > { %v1300_v34 = vadd.f32 %v1295_v38, %v1270_v40 }
 0x3d5   : > { %v1340_v43 = vpop.permute.xlu0 %1339  ;;  %v1342_v58 = vpop.permute.xlu1 %1341 }
 0x3d6   : > { %v1351_v44 = vadd.f32 %v1340_v43, %v1299_v41  ;;  %v1346_v45 = vsel %vm1345_vm1, %v1340_v43, %v1342_v58 }
 0x3d7   : > { %v1352_v48 = vadd.f32 %v1346_v45, %v1300_v34 }
 0x3d8   : > { %v1356_v49 = vadd.f32 %v1355_v42, %v1351_v44 }
 0x3d9   : > { %v1357_v36 = vadd.f32 %v1355_v42, %v1352_v48  ;;  %v1344_v37 = vpop.permute.xlu0 %1343 }
 0x3da   : > { %v1502_v56 = vmul.f32 -1.442695, %v1356_v49  ;;  %v1347_v63 = vsel %vm1345_vm1, %v1342_v58, %v1344_v37 }
 0x3db   : > { %v1503_v2 = vmul.f32 -1.442695, %v1357_v36  ;;  %v1353_v55 = vadd.f32 %v1347_v63, %v1301_v21 }
 0x3dc   : > { %1578 = vpow2.f32 %v1502_v56 }
 0x3dd   : > { %1580 = vpow2.f32 %v1503_v2  ;;  %v1358_v62 = vadd.f32 %v1355_v42, %v1353_v55 }
 0x3df   : > { %v1504_v60 = vmul.f32 -1.442695, %v1358_v62 }
 0x3e1   : > { %1582 = vpow2.f32 %v1504_v60 }
 0x3e6   : > { %v1579_v57 = vpop.eup %1578 }
 0x3e7   : > { %v1581_v3 = vpop.eup %1580  ;;  %v1368_v4 = vadd.f32 1.0, %v1579_v57 }
 0x3e8   : > { %v1369_v53 = vadd.f32 1.0, %v1581_v3 }
 0x3e9   : > { %1584 = vrcp.f32 %v1368_v4 }
 0x3ea   : > { %1586 = vrcp.f32 %v1369_v53 }
 0x3eb   : > { %v1583_v0 = vpop.eup %1582 }
 0x3ec   : > { %v1370_v7 = vadd.f32 1.0, %v1583_v0 }
 0x3ee   : > { %1588 = vrcp.f32 %v1370_v7 }
 0x3f3   : > { %v1585_v8 = vpop.eup %1584 }
 0x3f4   : > { %v1587_v9 = vpop.eup %1586  ;;  %v1380_v14 = vrot.slane %v1585_v8, %v1810_v31 }
 0x3f5   : > { %v1384_v10 = vrot.slane %v1587_v9, %v1810_v31 }
 0x3f6   : > { %1392 = vrot.lane.b32.xlu1 %v1380_v14, %s1666_s30 }
 0x3f7   : > { %1394 = vrot.lane.b32.xlu0 %v1384_v10, %s1666_s30 }
 0x3f8   : > { %v1589_v47 = vpop.eup %1588 }
 0x3f9   : > { %v1388_v11 = vrot.slane %v1589_v47, %v1810_v31 }
 0x3fb   : > { %1396 = vrot.lane.b32.xlu1 %v1388_v11, %s1666_s30  ;;  %s1594_s30 = sshll.u32 %s1667_s18, 4  ;;  %s1595_s30 = int_to_ptr.vmem [resolvable:$false] %s1594_s30 }
 0x3fc   : > { %s1596_s17 = scalar_lea.vmem %s1595_s30, 512  ;;  %p1597_p0 = scmp.lt.s32.totalorder %s2317_s12, %s1595_s30 }
 0x3fd   : > { %p1598_p1 = scmp.lt.s32.totalorder %s1596_s17, %s1590_s15 }
 0x3ff   : > { %p1599_p2 = por %p1598_p1, %p1597_p0 }
 0x401   : > { %p1600_p3 = pnand %p1599_p2, %p1593_p13 }
 0x468   : > { %v1393_v12 = vpop.permute.xlu1 %1392 }
 0x469   : > { %v1395_v13 = vpop.permute.xlu0 %1394 }
 0x46a   : > { %v1398_v16 = vsel %vm1244_vm10, %v1393_v12, %v1395_v13 }
 0x46b   : > { %v1402_v15 = vmul.f32 %v1398_v16, %v1837_v5 }
 0x46d   : > { %1404 = vst [vmem:[%s380_s26] sm:$0xff] %v1402_v15  ;;  %v1397_v59 = vpop.permute.xlu1 %1396 }
 0x46e   : > { %v1399_v17 = vsel %vm1244_vm10, %v1395_v13, %v1397_v59 }
 0x46f   : > { %v1403_v18 = vmul.f32 %v1399_v17, %v1840_v6 }
 0x471   : > { %1405 = vst [vmem:[%s380_s26 + $0x8] sm:$0xff] %v1403_v18 }
 0x472   : > { %1603 = shalt.err (!%p1600_p3)
}
 0x473   : > { %s1604_s23 = scalar_lea.hbm %s2315_s16, 256  ;;  %s1608_s14 = scalar_lea.hbm %s2368_s11, 512 }
 0x474   : > { %p1605_p4 = scmp.ne.s32.totalorder %s2315_s16, %s1604_s23  ;;  %p1609_p9 = scmp.lt.u32.totalorder %s2315_s16, %s2368_s11 }
 0x475   : > { %p1610_p10 = scmp.lt.u32.totalorder %s1608_s14, %s1604_s23  ;;  %p1612_p12 = scmp.lt.u32.totalorder %s1604_s23, %s2315_s16 }
 0x476   : > { %p1606_p7 = pnand %p1605_p4, %p1769_p5 }
 0x477   : > { %p1611_p11 = por %p1610_p10, %p1609_p9 }
 0x478   : > { %p1607_p8 = pneg %p1606_p7 }
 0x479   : > { %p1613_p13 = por %p1612_p12, %p1611_p11 }
 0x47b   : > { %p1614_p0 = pnand %p1613_p13, %p1607_p8 }
 0x47d   : > { %1617 = shalt.err (!%p1614_p0)
}
 0x47e   : > { %1512 = dma.vmem_to_hbm [thread:$0]  (%p1769_p5), %s2317_s12, 256, %s2315_s16, %s1407_s10  }
 0x47f PF: > { %p1518_p1 = scmp.ge.s32.totalorder %s1652_s22, 2  ;;  %s1433_s15 = sand.u32 1, %s1640_s19  }
 0x480   : > { %s1434_s30 = scalar_lea.sflag [#allocation5], %s1433_s15 }
 0x481   : > { %p1515_p2 = pnand %p1518_p1, %p1773_p6 }
 0x483   : > { %1635 = dma.done.wait (!%p1515_p2), %s1434_s30, 256  }
 0x484   : > { %1637 = vsyncadd (!%p1515_p2), %s1434_s30, 4294967040  ;;  %p22_p3 = scmp.ge.s32.totalorder %s1756_s24, 4   ;;  %s2403_s19 = smov %s1644_s20 }
 0x485   : > { %s2404_s20 = smov %s1648_s21  ;;  %s2405_s21 = smov %s1767_s27 }
 0x486   : > { %s2406_s22 = smov %s1756_s24  ;;  %24 = sbr.rel (!%p22_p3) target bundleno = 5 (0x5), region = 119 }
 0x48d   :  { %1439 = vsyncpa [#allocation5], 1 }
 0x48e   :  { %1441 = vsyncpa [#allocation5 + $0x1], 1 }

</bundles_post_ra>
